<compile_context>
chip_gen: v6e
topology: v6e:2x2x1
jax: 0.10.0
libtpu: 0.0.40
codegen_flags: <defaults>
</compile_context>

<pallas_src>
import functools

import jax
import jax.numpy as jnp
from jax.experimental import pallas as pl
from jax.experimental.pallas import tpu as pltpu


def _partial_conv_kernel(x_ref, w_ref, b_ref, o_ref, xpad_ref, patch_ref, *,
                         H, W, H_out, W_out, Cin, Cout, KH, KW, padding):
    """Partial conv for one batch element, as a single fused MXU matmul.

    x_ref:     (1, Cin, H, W)            input block (native NCHW, unpadded)
    w_ref:     (Cout, KH*KW*Cin)         partial weight, k = (kh*KW+kw)*Cin+ci
    b_ref:     (Cout, 1) float32         partial bias
    o_ref:     (1, Cout, H_out*W_out)    lane-dense output block
    xpad_ref:  (Cin, H+2p, W+2p)         VMEM scratch: zero-padded plane
    patch_ref: (KH*KW*Cin, H_out*W_out)  VMEM scratch: im2col patch matrix
    """
    # Fold the spatial zero-padding into the kernel: zero the padded plane,
    # then copy the interior (no jnp.pad HBM round trip in the wrapper).
    if padding > 0:
        xpad_ref[...] = jnp.zeros_like(xpad_ref)
    xpad_ref[:, padding:padding + H, padding:padding + W] = x_ref[0]

    # In-VMEM im2col: one contiguous (Cin, H_out*W_out) row block per filter
    # tap.  Row order (kh, kw, ci) matches the wrapper's weight reshape.
    for kh in range(KH):
        for kw in range(KW):
            tap = kh * KW + kw
            win = xpad_ref[:, kh:kh + H_out, kw:kw + W_out]       # (Cin, H_out, W_out)
            patch_ref[tap * Cin:(tap + 1) * Cin, :] = win.reshape(Cin, H_out * W_out)

    # Single fused MXU contraction over K = KH*KW*Cin, f32 accumulation.
    acc = jnp.dot(w_ref[...], patch_ref[...], preferred_element_type=jnp.float32)
    acc = acc + b_ref[...]                      # f32 bias, broadcast over lanes

    # Lane-dense store: last dim H_out*W_out (multiple of 128 for this shape).
    o_ref[0] = acc.astype(o_ref.dtype)


def partial_conv2d(x_nchw, weight_oihw, bias, part_splits, part_index,
                   *, stride=1, padding=1):
    """Compute only the output-channel slice owned by `part_index`
    (exactly what the remote worker returns to PartialConv2dProxy.forward).

    Supports stride=1, dilation=1, groups=1 (asserted / assumed)."""
    assert stride == 1, "kernel implemented for stride=1 (dilation=1, groups=1)"

    # Channel range for this part (what SplitConv2d assigned to this worker).
    start = int(sum(part_splits[:part_index]))
    stop = start + int(part_splits[part_index])
    w_part = weight_oihw[start:stop]          # (Cout_part, Cin, KH, KW)
    b_part = bias[start:stop]                 # (Cout_part,)

    N, Cin, H, W = x_nchw.shape
    Cout, _, KH, KW = w_part.shape
    H_out = H + 2 * padding - KH + 1
    W_out = W + 2 * padding - KW + 1
    assert H_out > 0 and W_out > 0, "invalid padding/kernel combination"
    K = KH * KW * Cin
    HWout = H_out * W_out
    Hp, Wp = H + 2 * padding, W + 2 * padding

    # Tiny-weight glue only: OIHW -> (Cout, KH*KW*Cin) with k = (kh*KW+kw)*Cin+ci,
    # matching the in-kernel patch-row order.  Bias stays float32 so it is added
    # to the f32 accumulator at full precision.  The input x needs NO glue.
    w2 = jnp.transpose(w_part, (0, 2, 3, 1)).reshape(Cout, K).astype(x_nchw.dtype)
    b2 = b_part.reshape(Cout, 1).astype(jnp.float32)

    kernel = functools.partial(
        _partial_conv_kernel, H=H, W=W, H_out=H_out, W_out=W_out,
        Cin=Cin, Cout=Cout, KH=KH, KW=KW, padding=padding)

    itemsize = jnp.dtype(x_nchw.dtype).itemsize
    cost = pl.CostEstimate(
        flops=2 * N * HWout * K * Cout,
        transcendentals=0,
        bytes_accessed=(x_nchw.size * itemsize
                        + w2.size * jnp.dtype(w2.dtype).itemsize
                        + b2.size * 4
                        + N * Cout * HWout * itemsize),
    )

    out_flat = pl.pallas_call(
        kernel,
        out_shape=jax.ShapeDtypeStruct((N, Cout, HWout), x_nchw.dtype),
        grid_spec=pltpu.PrefetchScalarGridSpec(
            num_scalar_prefetch=0,
            grid=(N,),
            in_specs=[
                pl.BlockSpec((1, Cin, H, W), lambda n: (n, 0, 0, 0)),
                pl.BlockSpec((Cout, K), lambda n: (0, 0)),
                pl.BlockSpec((Cout, 1), lambda n: (0, 0)),
            ],
            out_specs=pl.BlockSpec((1, Cout, HWout), lambda n: (n, 0, 0)),
            scratch_shapes=[
                pltpu.VMEM((Cin, Hp, Wp), x_nchw.dtype),   # padded input plane
                pltpu.VMEM((K, HWout), x_nchw.dtype),      # im2col patch matrix
            ],
        ),
        compiler_params=pltpu.CompilerParams(
            dimension_semantics=("parallel",),
        ),
        cost_estimate=cost,
    )(x_nchw, w2, b2)

    # (N, Cout, H_out*W_out) -> NCHW is a pure reshape (no transpose).
    return out_flat.reshape(N, Cout, H_out, W_out)


if __name__ == "__main__":
    key = jax.random.PRNGKey(0)
    kx, kw, kb = jax.random.split(key, 3)

    # Small, conv-shaped problem: original conv has 16 output channels split as
    # [2, 8, 6]; this proxy owns part_index=1 -> channels [2:10) (8 channels).
    N, Cin, H, W = 2, 4, 16, 16
    Cout_total, KH, KW = 16, 3, 3
    part_splits = [2, 8, 6]
    part_index = 1

    x = jax.random.normal(kx, (N, Cin, H, W), dtype=jnp.float32)
    weight = 0.1 * jax.random.normal(kw, (Cout_total, Cin, KH, KW), dtype=jnp.float32)
    bias = 0.1 * jax.random.normal(kb, (Cout_total,), dtype=jnp.float32)

    out = partial_conv2d(x, weight, bias, part_splits, part_index)
    out = jax.block_until_ready(out)

    # Pure-JAX reference of the same partial conv (correctness gate).
    s = sum(part_splits[:part_index])
    e = s + part_splits[part_index]
    ref = jax.lax.conv_general_dilated(
        x, weight[s:e], window_strides=(1, 1), padding=((1, 1), (1, 1)),
        dimension_numbers=("NCHW", "OIHW", "NCHW"),
    ) + bias[s:e][None, :, None, None]

    assert out.shape == (N, part_splits[part_index], H, W)
    assert jnp.allclose(out, ref, atol=1e-4, rtol=1e-4), "mismatch vs reference conv"
    print("KERNEL_OK")
</pallas_src>

<mosaic_0001>
module attributes {stable_mosaic.version = 11 : i64} {
  func.func @_partial_conv_kernel(%arg0: i32, %arg1: memref<1x4x16x16xf32, #tpu.memory_space<vmem>>, %arg2: memref<8x36xf32, #tpu.memory_space<vmem>>, %arg3: memref<8x1xf32, #tpu.memory_space<vmem>>, %arg4: memref<1x8x256xf32, #tpu.memory_space<vmem>>, %arg5: memref<4x18x18xf32, #tpu.memory_space<vmem>>, %arg6: memref<36x256xf32, #tpu.memory_space<vmem>>) attributes {dimension_semantics = [#tpu.dimension_semantics<parallel>], iteration_bounds = array<i64: 2>, scalar_prefetch = 0 : i64, scratch_operands = 2 : i64, tpu.core_type = #tpu.core_type<tc>, window_params = [{transform_indices = @transform_0, window_bounds = array<i64: 1, 4, 16, 16>}, {pipeline_mode = #tpu.pipeline_mode<synchronous>, transform_indices = @transform_1, window_bounds = array<i64: 8, 36>}, {pipeline_mode = #tpu.pipeline_mode<synchronous>, transform_indices = @transform_2, window_bounds = array<i64: 8, 1>}, {transform_indices = @transform_3, window_bounds = array<i64: 1, 8, 256>}]} {
    %cst = arith.constant 0.000000e+00 : f32
    %0 = vector.broadcast %cst : f32 to vector<4x18x18xf32>
    %c0 = arith.constant 0 : index
    %c0_0 = arith.constant 0 : index
    %c0_1 = arith.constant 0 : index
    %1 = vector.load %arg5[%c0, %c0_0, %c0_1] : memref<4x18x18xf32, #tpu.memory_space<vmem>>, vector<4x18x18xf32>
    tpu.vector_store %arg5[%c0, %c0_0, %c0_1], %0 {strides = array<i32>} : memref<4x18x18xf32, #tpu.memory_space<vmem>>, vector<4x18x18xf32>,
    %c0_2 = arith.constant 0 : index
    %c0_3 = arith.constant 0 : index
    %c0_4 = arith.constant 0 : index
    %c0_5 = arith.constant 0 : index
    %2 = vector.load %arg1[%c0_2, %c0_3, %c0_4, %c0_5] : memref<1x4x16x16xf32, #tpu.memory_space<vmem>>, vector<1x4x16x16xf32>
    %3 = vector.shape_cast %2 : vector<1x4x16x16xf32> to vector<4x16x16xf32>
    %c0_6 = arith.constant 0 : index
    %c1 = arith.constant 1 : index
    %c1_7 = arith.constant 1 : index
    %4 = vector.load %arg5[%c0_6, %c1, %c1_7] : memref<4x18x18xf32, #tpu.memory_space<vmem>>, vector<4x16x16xf32>
    tpu.vector_store %arg5[%c0_6, %c1, %c1_7], %3 {strides = array<i32>} : memref<4x18x18xf32, #tpu.memory_space<vmem>>, vector<4x16x16xf32>,
    %c0_8 = arith.constant 0 : index
    %c0_9 = arith.constant 0 : index
    %c0_10 = arith.constant 0 : index
    %5 = vector.load %arg5[%c0_8, %c0_9, %c0_10] : memref<4x18x18xf32, #tpu.memory_space<vmem>>, vector<4x16x16xf32>
    %6 = vector.shape_cast %5 : vector<4x16x16xf32> to vector<4x256xf32>
    %c0_11 = arith.constant 0 : index
    %c0_12 = arith.constant 0 : index
    %7 = vector.load %arg6[%c0_11, %c0_12] : memref<36x256xf32, #tpu.memory_space<vmem>>, vector<4x256xf32>
    tpu.vector_store %arg6[%c0_11, %c0_12], %6 {strides = array<i32>} : memref<36x256xf32, #tpu.memory_space<vmem>>, vector<4x256xf32>,
    %c0_13 = arith.constant 0 : index
    %c0_14 = arith.constant 0 : index
    %c1_15 = arith.constant 1 : index
    %8 = vector.load %arg5[%c0_13, %c0_14, %c1_15] : memref<4x18x18xf32, #tpu.memory_space<vmem>>, vector<4x16x16xf32>
    %9 = vector.shape_cast %8 : vector<4x16x16xf32> to vector<4x256xf32>
    %c4 = arith.constant 4 : index
    %c0_16 = arith.constant 0 : index
    %10 = vector.load %arg6[%c4, %c0_16] : memref<36x256xf32, #tpu.memory_space<vmem>>, vector<4x256xf32>
    tpu.vector_store %arg6[%c4, %c0_16], %9 {strides = array<i32>} : memref<36x256xf32, #tpu.memory_space<vmem>>, vector<4x256xf32>,
    %c0_17 = arith.constant 0 : index
    %c0_18 = arith.constant 0 : index
    %c2 = arith.constant 2 : index
    %11 = vector.load %arg5[%c0_17, %c0_18, %c2] : memref<4x18x18xf32, #tpu.memory_space<vmem>>, vector<4x16x16xf32>
    %12 = vector.shape_cast %11 : vector<4x16x16xf32> to vector<4x256xf32>
    %c8 = arith.constant 8 : index
    %c0_19 = arith.constant 0 : index
    %13 = vector.load %arg6[%c8, %c0_19] : memref<36x256xf32, #tpu.memory_space<vmem>>, vector<4x256xf32>
    tpu.vector_store %arg6[%c8, %c0_19], %12 {strides = array<i32>} : memref<36x256xf32, #tpu.memory_space<vmem>>, vector<4x256xf32>,
    %c0_20 = arith.constant 0 : index
    %c1_21 = arith.constant 1 : index
    %c0_22 = arith.constant 0 : index
    %14 = vector.load %arg5[%c0_20, %c1_21, %c0_22] : memref<4x18x18xf32, #tpu.memory_space<vmem>>, vector<4x16x16xf32>
    %15 = vector.shape_cast %14 : vector<4x16x16xf32> to vector<4x256xf32>
    %c12 = arith.constant 12 : index
    %c0_23 = arith.constant 0 : index
    %16 = vector.load %arg6[%c12, %c0_23] : memref<36x256xf32, #tpu.memory_space<vmem>>, vector<4x256xf32>
    tpu.vector_store %arg6[%c12, %c0_23], %15 {strides = array<i32>} : memref<36x256xf32, #tpu.memory_space<vmem>>, vector<4x256xf32>,
    %c0_24 = arith.constant 0 : index
    %c1_25 = arith.constant 1 : index
    %c1_26 = arith.constant 1 : index
    %17 = vector.load %arg5[%c0_24, %c1_25, %c1_26] : memref<4x18x18xf32, #tpu.memory_space<vmem>>, vector<4x16x16xf32>
    %18 = vector.shape_cast %17 : vector<4x16x16xf32> to vector<4x256xf32>
    %c16 = arith.constant 16 : index
    %c0_27 = arith.constant 0 : index
    %19 = vector.load %arg6[%c16, %c0_27] : memref<36x256xf32, #tpu.memory_space<vmem>>, vector<4x256xf32>
    tpu.vector_store %arg6[%c16, %c0_27], %18 {strides = array<i32>} : memref<36x256xf32, #tpu.memory_space<vmem>>, vector<4x256xf32>,
    %c0_28 = arith.constant 0 : index
    %c1_29 = arith.constant 1 : index
    %c2_30 = arith.constant 2 : index
    %20 = vector.load %arg5[%c0_28, %c1_29, %c2_30] : memref<4x18x18xf32, #tpu.memory_space<vmem>>, vector<4x16x16xf32>
    %21 = vector.shape_cast %20 : vector<4x16x16xf32> to vector<4x256xf32>
    %c20 = arith.constant 20 : index
    %c0_31 = arith.constant 0 : index
    %22 = vector.load %arg6[%c20, %c0_31] : memref<36x256xf32, #tpu.memory_space<vmem>>, vector<4x256xf32>
    tpu.vector_store %arg6[%c20, %c0_31], %21 {strides = array<i32>} : memref<36x256xf32, #tpu.memory_space<vmem>>, vector<4x256xf32>,
    %c0_32 = arith.constant 0 : index
    %c2_33 = arith.constant 2 : index
    %c0_34 = arith.constant 0 : index
    %23 = vector.load %arg5[%c0_32, %c2_33, %c0_34] : memref<4x18x18xf32, #tpu.memory_space<vmem>>, vector<4x16x16xf32>
    %24 = vector.shape_cast %23 : vector<4x16x16xf32> to vector<4x256xf32>
    %c24 = arith.constant 24 : index
    %c0_35 = arith.constant 0 : index
    %25 = vector.load %arg6[%c24, %c0_35] : memref<36x256xf32, #tpu.memory_space<vmem>>, vector<4x256xf32>
    tpu.vector_store %arg6[%c24, %c0_35], %24 {strides = array<i32>} : memref<36x256xf32, #tpu.memory_space<vmem>>, vector<4x256xf32>,
    %c0_36 = arith.constant 0 : index
    %c2_37 = arith.constant 2 : index
    %c1_38 = arith.constant 1 : index
    %26 = vector.load %arg5[%c0_36, %c2_37, %c1_38] : memref<4x18x18xf32, #tpu.memory_space<vmem>>, vector<4x16x16xf32>
    %27 = vector.shape_cast %26 : vector<4x16x16xf32> to vector<4x256xf32>
    %c28 = arith.constant 28 : index
    %c0_39 = arith.constant 0 : index
    %28 = vector.load %arg6[%c28, %c0_39] : memref<36x256xf32, #tpu.memory_space<vmem>>, vector<4x256xf32>
    tpu.vector_store %arg6[%c28, %c0_39], %27 {strides = array<i32>} : memref<36x256xf32, #tpu.memory_space<vmem>>, vector<4x256xf32>,
    %c0_40 = arith.constant 0 : index
    %c2_41 = arith.constant 2 : index
    %c2_42 = arith.constant 2 : index
    %29 = vector.load %arg5[%c0_40, %c2_41, %c2_42] : memref<4x18x18xf32, #tpu.memory_space<vmem>>, vector<4x16x16xf32>
    %30 = vector.shape_cast %29 : vector<4x16x16xf32> to vector<4x256xf32>
    %c32 = arith.constant 32 : index
    %c0_43 = arith.constant 0 : index
    %31 = vector.load %arg6[%c32, %c0_43] : memref<36x256xf32, #tpu.memory_space<vmem>>, vector<4x256xf32>
    tpu.vector_store %arg6[%c32, %c0_43], %30 {strides = array<i32>} : memref<36x256xf32, #tpu.memory_space<vmem>>, vector<4x256xf32>,
    %c0_44 = arith.constant 0 : index
    %c0_45 = arith.constant 0 : index
    %32 = vector.load %arg2[%c0_44, %c0_45] : memref<8x36xf32, #tpu.memory_space<vmem>>, vector<8x36xf32>
    %c0_46 = arith.constant 0 : index
    %c0_47 = arith.constant 0 : index
    %33 = vector.load %arg6[%c0_46, %c0_47] : memref<36x256xf32, #tpu.memory_space<vmem>>, vector<36x256xf32>
    %cst_48 = arith.constant dense<0.000000e+00> : vector<8x256xf32>
    %34 = tpu.matmul %32, %33, %cst_48 {dimension_numbers = #tpu.dot_dimension_numbers<[1], [0], [0], [1], [0, 0, 1, 1], [], []>} : vector<8x36xf32>, vector<36x256xf32>, vector<8x256xf32> -> vector<8x256xf32>
    %c0_49 = arith.constant 0 : index
    %c0_50 = arith.constant 0 : index
    %35 = vector.load %arg3[%c0_49, %c0_50] : memref<8x1xf32, #tpu.memory_space<vmem>>, vector<8x1xf32>
    %36 = vector.broadcast %35 : vector<8x1xf32> to vector<8x256xf32>
    %37 = arith.addf %34, %36 : vector<8x256xf32>
    %c0_51 = arith.constant 0 : index
    %c0_52 = arith.constant 0 : index
    %c0_53 = arith.constant 0 : index
    %38 = vector.load %arg4[%c0_51, %c0_52, %c0_53] : memref<1x8x256xf32, #tpu.memory_space<vmem>>, vector<1x8x256xf32>
    %39 = vector.shape_cast %38 : vector<1x8x256xf32> to vector<8x256xf32>
    %40 = vector.shape_cast %37 : vector<8x256xf32> to vector<1x8x256xf32>
    tpu.vector_store %arg4[%c0_51, %c0_52, %c0_53], %40 {strides = array<i32>} : memref<1x8x256xf32, #tpu.memory_space<vmem>>, vector<1x8x256xf32>,
    return
  }
  func.func @transform_0(%arg0: i32) -> (i32, i32, i32, i32) {
    %c0_i32 = arith.constant 0 : i32
    %c0_i32_0 = arith.constant 0 : i32
    %c0_i32_1 = arith.constant 0 : i32
    %c0_i32_2 = arith.constant 0 : i32
    return %arg0, %c0_i32, %c0_i32_0, %c0_i32_1 : i32, i32, i32, i32
  }
  func.func @transform_1(%arg0: i32) -> (i32, i32) {
    %c0_i32 = arith.constant 0 : i32
    %c0_i32_0 = arith.constant 0 : i32
    %c0_i32_1 = arith.constant 0 : i32
    return %c0_i32, %c0_i32_0 : i32, i32
  }
  func.func @transform_2(%arg0: i32) -> (i32, i32) {
    %c0_i32 = arith.constant 0 : i32
    %c0_i32_0 = arith.constant 0 : i32
    %c0_i32_1 = arith.constant 0 : i32
    return %c0_i32, %c0_i32_0 : i32, i32
  }
  func.func @transform_3(%arg0: i32) -> (i32, i32, i32) {
    %c0_i32 = arith.constant 0 : i32
    %c0_i32_0 = arith.constant 0 : i32
    %c0_i32_1 = arith.constant 0 : i32
    return %arg0, %c0_i32, %c0_i32_0 : i32, i32, i32
  }
}

</mosaic_0001>

<bundles_post_ra>
// kernel: tpu_custom_call.1
= control target key start
LH: loop header
LB: loop body
LE: loop exit
PB: predicated region body
PF: predicated region fallthrough
CT: control target
= control target key end

     0   :  { %8 = vsyncpa [#allocation5], 0  ;;  %s4466_s0 = inlined_call_operand.hbm [shape: f32[2,4,16,16], index: 0, kind: input, shape index: {}]   ;;  %s4467_s1 = inlined_call_operand.vmem [shape: f32[8,36], index: 1, kind: input, shape index: {}]   ;;  %s4468_s2 = inlined_call_operand.vmem [shape: f32[8,1], index: 2, kind: input, shape index: {}]   ;;  %s4469_s3 = inlined_call_operand.hbm [shape: f32[2,8,256], index: 3, kind: output, shape index: {}]  }
   0x1   :  { %10 = vsyncpa [#allocation5 + $0x1], 0 }
   0x2   :  { %11 = vsyncpa [#allocation6], 0 }
   0x3   :  { %13 = vsyncpa [#allocation6 + $0x1], 0  ;;  %s2841_s12 = smov 0   ;;  %s2843_s13 = smov 0  }
   0x4   :  { %s2845_s14 = smov 0   ;;  %s2847_s15 = smov 0  }
   0x5 LB: > { %s2862_s16 = sadd.s32 4294967295, %s2801_s15   ;;  %s2605_s17 = sadd.s32 4294967294, %s2801_s15   ;;  %s2801_s15 = sphi %s2847_s15, %s4650_s15   ;;  %s2797_s14 = sphi %s2845_s14, %s4649_s14   ;;  %s2793_s13 = sphi %s2843_s13, %s4648_s13   ;;  %s2789_s12 = sphi %s2841_s12, %s4647_s12  }
   0x6   : > { %s2866_s18 = sadd.s32 1, %s2801_s15   ;;  %s26_s19 = sadd.s32 1, %s2797_s14 }
   0x7   : > { %s23_s20 = ssub.s32 %s2801_s15, %s2866_s18  ;;  %p33_p0 = scmp.ne.s32.totalorder %s2797_s14, %s2793_s13 }
   0x8   : > { %p24_p1 = scmp.eq.s32.totalorder %s23_s20, 0  ;;  %p34_p2 = scmp.eq.s32.totalorder %s2801_s15, 0 }
   0x9   : > { %p39_p3 = scmp.ne.s32.totalorder %s2793_s13, %s2789_s12  ;;  %p40_p4 = scmp.eq.s32.totalorder %s2862_s16, 0 }
   0xa   : > { %s2878_s21 = scalar_select %p24_p1, %s2797_s14, %s26_s19  }
   0xb   : > { %p2880_p5 = por %p34_p2, %p33_p0  ;;  %p2884_p6 = por %p40_p4, %p39_p3 }
   0xc   : > { %p105_p7 = scmp.eq.s32.totalorder %s2862_s16, 1  ;;  %p111_p8 = scmp.eq.s32.totalorder %s2605_s17, 1 }
   0xd   : > { %s4512_s23 = scalar_select %p2884_p6, 1, 0 }
   0xe   : > { %p2636_p10 = scmp.lt.s32.totalorder %s2801_s15, 2  ;;  %p2891_p11 = por %p105_p7, %p33_p0 }
   0xf   : > { %p2895_p12 = por %p111_p8, %p39_p3  ;;  %s137_s26 = sand.u32 1, %s2797_s14  }
  0x10   : > { %s4513_s24 = scalar_select %p2891_p11, 1, 0 }
  0x11   : > { %s4514_s25 = scalar_select %p2895_p12, 1, 0 }
  0x12   : > { %s2622_s27 = sshll.u32 %s2801_s15, 10  ;;  %s2608_s28 = sshll.u32 %s137_s26, 6 }
  0x13   : > { %s2904_s4 = scalar_lea.hbm %s4466_s0, %s2622_s27  ;;  %s141_s5 = scalar_lea.vmem [#allocation4], %s2608_s28 }
  0x14   : > { %s148_s6 = sshll.u32 %s141_s5, 4  ;;  %p2908_p13 = pnand %p2636_p10, %p2880_p5  ;;  %s2912_s6 = int_to_ptr.vmem [resolvable:$true] %s148_s6 }
  0x15   : > { %s2914_s8 = scalar_lea.sflag [#allocation5], %s137_s26  ;;  %s2709_s9 = scalar_lea.hbm %s2904_s4, 1024 }
  0x16   : > { %p2710_p0 = scmp.ne.s32.totalorder %s2904_s4, %s2709_s9  ;;  %p2711_p1 = pneg %p2908_p13 }
  0x17   : > { %s2714_s17 = scalar_lea.hbm %s4466_s0, 2048  ;;  %p2715_p4 = scmp.lt.s32.totalorder %s2904_s4, %s4466_s0 }
  0x18   : > { %p2712_p2 = pnand %p2711_p1, %p2710_p0  ;;  %p2716_p5 = scmp.lt.s32.totalorder %s2714_s17, %s2709_s9 }
  0x1a   : > { %p2713_p3 = pneg %p2712_p2  ;;  %p2717_p7 = por %p2716_p5, %p2715_p4 }
  0x1c   : > { %p2718_p8 = pnand %p2717_p7, %p2713_p3 }
  0x1e   : > { %2721 = shalt.err (!%p2718_p8)
}
  0x1f   : > { %s2722_s22 = scalar_lea.vmem %s2912_s6, 1024  ;;  %s2803_s26 = smov [#allocation4]  }
  0x20   : > { %p2723_p10 = scmp.ne.s32.totalorder %s2912_s6, %s2722_s22  ;;  %s2727_s27 = sshll.u32 %s2803_s26, 4  ;;  %s2728_s27 = int_to_ptr.vmem [resolvable:$false] %s2727_s27 }
  0x21   : > { %s2729_s28 = scalar_lea.vmem %s2728_s27, 2048  ;;  %p2730_p2 = scmp.lt.s32.totalorder %s2912_s6, %s2728_s27 }
  0x22   : > { %p2725_p9 = pnand %p2723_p10, %p2711_p1  ;;  %p2731_p12 = scmp.lt.s32.totalorder %s2729_s28, %s2722_s22 }
  0x24   : > { %p2726_p0 = pneg %p2725_p9  ;;  %p2732_p11 = por %p2731_p12, %p2730_p2 }
  0x26   : > { %p2733_p6 = pnand %p2732_p11, %p2726_p0 }
  0x28   : > { %2736 = shalt.err (!%p2733_p6)
}
  0x29   : > { %s2804_s29 = smov 128   ;;  %s2805_s30 = smov 8  }
  0x2a   : > { %2631 = dma.hbm_to_vmem [thread:$0]  (!%p2908_p13), %s2904_s4, 1024, %s2912_s6, %s2914_s8, %s2804_s29, %s2804_s29, %s2805_s30  }
  0x2b   : > { %p2611_p9 = scmp.ge.s32.totalorder %s2801_s15, 1  ;;  %p156_p1 = scmp.lt.s32.totalorder %s2801_s15, 3 }
  0x2d   : > { %p157_p3 = pnand %p2611_p9, %p156_p1 }
  0x2f   : > { %160 = sbr.rel (%p157_p3) target bundleno = 888 (0x378), region = 32 }
  0x34   : > { %s2938_s5 = sand.u32 1, %s2793_s13   ;;  %p4516_p6 = scmp.ne.s32.totalorder %s4512_s23, 0 }
  0x35   : > { %s2612_s9 = sshll.u32 %s2938_s5, 6  ;;  %s163_s10 = scalar_lea.sflag [#allocation5], %s2938_s5 }
  0x36   : > { %s2942_s11 = scalar_lea.vmem [#allocation4], %s2612_s9 }
  0x37   : > { %2780 = dma.done.wait (%p4516_p6), %s163_s10, 1024  }
  0x38   : > { %2782 = vsyncadd (%p4516_p6), %s163_s10, 4294966272  ;;  %vm189_vm0 = vcmask 146432   ;;  %vm192_vm1 = vcmask 140288   ;;  %v4472_v0 = vmov 0.0   ;;  %v208_v1 = vld [vmem:[%s2942_s11 + $0x28] sm:$0xff]  ;;  %s2807_s23 = smov 1   ;;  %v265_v13 = vlaneseq }
  0x39   : > { %198 = vst.msk [vmem:[#allocation2 + $0x38] sm:$0xff] %vm189_vm0, %v4472_v0  ;;  %190 = vst.msk [vmem:[#allocation2] sm:$0xff] %vm189_vm0, %v4472_v0  ;;  %2511 = vmatprep.mubr.f32.mxu0 %v4472_v0  ;;  %v204_v2 = vld [vmem:[%s2942_s11 + $0x8] sm:$0xff]  ;;  %229 = vrot.lane.b32.xlu1 %v208_v1, %s2807_s23  ;;  %v210_v3 = vld [vmem:[%s2942_s11 + $0x38] sm:$0xff]  ;;  %vm243_vm2 = vcmask 138248   ;;  %s2809_s4 = smov 127  }
  0x3a   : > { %199 = vst.msk [vmem:[#allocation2 + $0x40] sm:$0x3] %vm192_vm1, %v4472_v0  ;;  %193 = vst.msk [vmem:[#allocation2 + $0x10] sm:$0x3] %vm192_vm1, %v4472_v0  ;;  %221 = vrot.lane.b32.xlu0 %v204_v2, %s2807_s23  ;;  %v206_v4 = vld [vmem:[%s2942_s11 + $0x18] sm:$0xff]  ;;  %v205_v5 = vld [vmem:[%s2942_s11 + $0x10] sm:$0xff] }
  0x3b   : > { %191 = vst.msk [vmem:[#allocation2 + $0x8] sm:$0xff] %vm189_vm0, %v4472_v0  ;;  %194 = vst.msk [vmem:[#allocation2 + $0x18] sm:$0xff] %vm189_vm0, %v4472_v0  ;;  %v203_v6 = vld [vmem:[%s2942_s11] sm:$0xff]  ;;  %v209_v7 = vld [vmem:[%s2942_s11 + $0x30] sm:$0xff]  ;;  %v2808_v11 = vmov 1983009808  }
  0x3c   : > { %195 = vst.msk [vmem:[#allocation2 + $0x20] sm:$0xff] %vm189_vm0, %v4472_v0  ;;  %197 = vst.msk [vmem:[#allocation2 + $0x30] sm:$0xff] %vm189_vm0, %v4472_v0  ;;  %v207_v8 = vld [vmem:[%s2942_s11 + $0x20] sm:$0xff]  ;;  %v263_v12 = vunpack.c.l.s4 %v2808_v11  ;;  %v2973_v17 = vshrl.u32 %v265_v13, 7  ;;  %s2810_s6 = smov 126   ;;  %s2812_s7 = smov 32  }
  0x3d   : > { %196 = vst.msk [vmem:[#allocation2 + $0x28] sm:$0x3] %vm192_vm1, %v4472_v0  ;;  %202 = vst.msk [vmem:[#allocation2 + $0x58] sm:$0x3] %vm192_vm1, %v4472_v0  ;;  %233 = vrot.lane.b32.xlu1 %v210_v3, %s2807_s23  ;;  %s2813_s8 = smov 64   ;;  %s2814_s17 = smov 16  }
  0x3e   : > { %200 = vst.msk [vmem:[#allocation2 + $0x48] sm:$0xff] %vm189_vm0, %v4472_v0  ;;  %201 = vst.msk [vmem:[#allocation2 + $0x50] sm:$0xff] %vm189_vm0, %v4472_v0  ;;  %225 = vrot.lane.b32.xlu0 %v206_v4, %s2807_s23  ;;  %v264_v16 = vunpack.c.0.s8 %v263_v12  ;;  %s2815_s19 = smov 48   ;;  %s2816_s20 = smov 80   ;;  %vm452_vm3 = vcmask 130048   ;;  %vm454_vm4 = vcmask 261120  }
  0x3f   : > { %s2817_s22 = smov 96   ;;  %s2818_s26 = smov 112   ;;  %vm456_vm5 = vcmask 392192   ;;  %vm458_vm6 = vcmask 523264   ;;  %vm460_vm7 = vcmask 654336   ;;  %vm462_vm8 = vcmask 785408  }
  0x40   : > { %v2987_v28 = vsub.s32 %v264_v16, %v2973_v17  ;;  %vm464_vm9 = vcmask 916480   ;;  %vm2440_vm10 = vcmask 1043456   ;;  %vm2436_vm11 = vcmask 293888   ;;  %s2613_s9 = sshll.u32 %s2938_s5, 4  ;;  %s2623_s10 = sshll.u32 %s2862_s16, 8 }
  0x41   : > { %223 = vrot.lane.b32.xlu1 %v205_v5, %s2807_s23  ;;  %s188_s11 = scalar_lea.vmem [#allocation7], %s2613_s9  ;;  %p4644_p12 = scmp.ne.s32.totalorder %s4513_s24, 0 }
  0x42   : > { %219 = vrot.lane.b32.xlu0 %v203_v6, %s2807_s23 }
  0x45   : > { %231 = vrot.lane.b32.xlu1 %v209_v7, %s2807_s23 }
  0x46   : > { %227 = vrot.lane.b32.xlu0 %v207_v8, %s2807_s23  ;;  %s2535_s23 = sshll.u32 %s188_s11, 4  ;;  %s2536_s23 = int_to_ptr.vmem [resolvable:$true] %s2535_s23 }
  0xab   : > { %v230_v9 = vpop.permute.xlu1 %229 }
  0xac   : > { %v222_v10 = vpop.permute.xlu0 %221  ;;  %249 = vst.msk [vmem:[#allocation2 + $0x39] sm:$0xff] %vm243_vm2, %v230_v9 }
  0xad   : > { %245 = vst.msk [vmem:[#allocation2 + $0x9] sm:$0xff] %vm243_vm2, %v222_v10 }
  0xaf   : > { %v234_v14 = vpop.permute.xlu1 %233 }
  0xb0   : > { %v226_v15 = vpop.permute.xlu0 %225  ;;  %251 = vst.msk [vmem:[#allocation2 + $0x51] sm:$0xff] %vm243_vm2, %v234_v14 }
  0xb1   : > { %247 = vst.msk [vmem:[#allocation2 + $0x21] sm:$0xff] %vm243_vm2, %v226_v15 }
  0xb3   : > { %v224_v18 = vpop.permute.xlu1 %223  ;;  %v1922_v21 = vld [vmem:[#allocation2 + $0x3a] sm:$0xff] }
  0xb4   : > { %v220_v19 = vpop.permute.xlu0 %219  ;;  %v1918_v20 = vld [vmem:[#allocation2 + $0xa] sm:$0xff]  ;;  %246 = vst.msk [vmem:[#allocation2 + $0x19] sm:$0xff] %vm243_vm2, %v224_v18  ;;  %v2980_v23 = vld [vmem:[#allocation2 + $0x39] sm:$0xff] }
  0xb5   : > { %v2975_v22 = vld [vmem:[#allocation2 + $0x9] sm:$0xff]  ;;  %244 = vst.msk [vmem:[#allocation2 + $0x1] sm:$0xff] %vm243_vm2, %v220_v19  ;;  %1935 = vrot.lane.b32.xlu0 %v1918_v20, %s2809_s4  ;;  %v1777_v24 = vcombine.low %v1918_v20, %v1922_v21  ;;  %v1778_v25 = vcombine.high %v1918_v20, %v1922_v21 }
  0xb6   : > { %v1053_v26 = vcombine.low %v2975_v22, %v2980_v23  ;;  %v1054_v27 = vcombine.high %v2975_v22, %v2980_v23 }
  0xb7   : > { %v232_v29 = vpop.permute.xlu1 %231  ;;  %v1924_v32 = vld [vmem:[#allocation2 + $0x52] sm:$0xff]  ;;  %v3002_v39 = vrot.slane %v1777_v24, %v2987_v28  ;;  %v3008_v41 = vrot.slane %v1778_v25, %v2987_v28 }
  0xb8   : > { %v228_v30 = vpop.permute.xlu0 %227  ;;  %v1920_v31 = vld [vmem:[#allocation2 + $0x22] sm:$0xff]  ;;  %250 = vst.msk [vmem:[#allocation2 + $0x49] sm:$0xff] %vm243_vm2, %v232_v29  ;;  %v2995_v34 = vld [vmem:[#allocation2 + $0x51] sm:$0xff]  ;;  %v3014_v43 = vrot.slane %v1053_v26, %v2987_v28  ;;  %v3020_v45 = vrot.slane %v1054_v27, %v2987_v28 }
  0xb9   : > { %v2989_v33 = vld [vmem:[#allocation2 + $0x21] sm:$0xff]  ;;  %248 = vst.msk [vmem:[#allocation2 + $0x31] sm:$0xff] %vm243_vm2, %v228_v30  ;;  %1939 = vrot.lane.b32.xlu1 %v1920_v31, %s2809_s4  ;;  %1943 = vrot.lane.b32.xlu0 %v1922_v21, %s2809_s4  ;;  %v1793_v35 = vcombine.low %v1920_v31, %v1924_v32  ;;  %v1794_v36 = vcombine.high %v1920_v31, %v1924_v32 }
  0xba   : > { %v1069_v37 = vcombine.low %v2989_v33, %v2995_v34  ;;  %v1070_v38 = vcombine.high %v2989_v33, %v2995_v34  ;;  %4517 = vst [vmem:[#allocation10_spill] sm:$0xff] %v3020_v45 }
  0xbb   : > { %v3005_v40 = vrot.slane %v1793_v35, %v2987_v28  ;;  %v3011_v42 = vrot.slane %v1794_v36, %v2987_v28  ;;  %v1919_v55 = vld [vmem:[#allocation2 + $0x1a] sm:$0xff] }
  0xbc   : > { %v3017_v44 = vrot.slane %v1069_v37, %v2987_v28  ;;  %v3023_v46 = vrot.slane %v1070_v38, %v2987_v28  ;;  %v1917_v50 = vld [vmem:[#allocation2 + $0x2] sm:$0xff]  ;;  %v3043_v57 = vld [vmem:[#allocation2 + $0x19] sm:$0xff] }
  0xbd   : > { %1947 = vrot.lane.b32.xlu1 %v1924_v32, %s2809_s4  ;;  %2189 = vrot.lane.b32.xlu0 %v1918_v20, %s2810_s6  ;;  %v1810_v47 = vcombine.high %v3002_v39, %v3005_v40  ;;  %v1825_v48 = vcombine.low %v3008_v41, %v3011_v42  ;;  %v1809_v49 = vcombine.low %v3002_v39, %v3005_v40  ;;  %v3041_v56 = vld [vmem:[#allocation2 + $0x1] sm:$0xff] }
  0xbe   : > { %4518 = vst [vmem:[#allocation11_spill] sm:$0xff] %v3023_v46  ;;  %v1086_v51 = vcombine.high %v3014_v43, %v3017_v44  ;;  %v1085_v52 = vcombine.low %v3014_v43, %v3017_v44  ;;  %v1101_v53 = vcombine.low %v3020_v45, %v3023_v46  ;;  %v1826_v54 = vcombine.high %v3008_v41, %v3011_v42  ;;  %v476_v15 = vld [vmem:[#allocation2 + $0x8] sm:$0xff]  ;;  %v478_v16 = vld [vmem:[#allocation2 + $0x20] sm:$0xff] }
  0xbf   : > { %v1923_v60 = vld [vmem:[#allocation2 + $0x4a] sm:$0xff] }
  0xc0   : > { %v1921_v59 = vld [vmem:[#allocation2 + $0x32] sm:$0xff]  ;;  %v3051_v62 = vld [vmem:[#allocation2 + $0x49] sm:$0xff]  ;;  %v1725_v1 = vcombine.low %v1919_v55, %v1923_v60  ;;  %v1726_v9 = vcombine.high %v1919_v55, %v1923_v60 }
  0xc1   : > { %v3047_v61 = vld [vmem:[#allocation2 + $0x31] sm:$0xff]  ;;  %2193 = vrot.lane.b32.xlu1 %v1920_v31, %s2810_s6  ;;  %2197 = vrot.lane.b32.xlu0 %v1922_v21, %s2810_s6  ;;  %v1709_v63 = vcombine.low %v1917_v50, %v1921_v59  ;;  %v1002_v3 = vcombine.high %v3043_v57, %v3051_v62  ;;  %v1710_v4 = vcombine.high %v1917_v50, %v1921_v59 }
  0xc2   : > { %v986_v2 = vcombine.high %v3041_v56, %v3047_v61  ;;  %v3061_v6 = vrot.slane %v1725_v1, %v2987_v28  ;;  %v3073_v11 = vrot.slane %v1726_v9, %v2987_v28  ;;  %v480_v12 = vld [vmem:[#allocation2 + $0x38] sm:$0xff]  ;;  %v482_v14 = vld [vmem:[#allocation2 + $0x50] sm:$0xff] }
  0xc3   : > { %v3058_v5 = vrot.slane %v1709_v63, %v2987_v28  ;;  %v3068_v8 = vrot.slane %v1710_v4, %v2987_v28  ;;  %v328_v18 = vcombine.low %v476_v15, %v480_v12  ;;  %v344_v19 = vcombine.low %v478_v16, %v482_v14 }
  0xc4   : > { %4520 = vst [vmem:[#allocation13_spill] sm:$0xff] %v3073_v11  ;;  %v3082_v20 = vrot.slane %v986_v2, %v2987_v28  ;;  %v3085_v21 = vrot.slane %v1002_v3, %v2987_v28  ;;  %v329_v26 = vcombine.high %v476_v15, %v480_v12  ;;  %v345_v31 = vcombine.high %v478_v16, %v482_v14 }
  0xc5   : > { %2201 = vrot.lane.b32.xlu1 %v1924_v32, %s2810_s6  ;;  %1933 = vrot.lane.b32.xlu0 %v1917_v50, %s2809_s4  ;;  %v1742_v7 = vcombine.high %v3058_v5, %v3061_v6  ;;  %4519 = vst [vmem:[#allocation12_spill] sm:$0xff] %v3068_v8  ;;  %v1741_v10 = vcombine.low %v3058_v5, %v3061_v6 }
  0xc6   : > { %v1757_v13 = vcombine.low %v3068_v8, %v3073_v11  ;;  %v3088_v24 = vrot.slane %v328_v18, %v2987_v28  ;;  %v3093_v27 = vrot.slane %v344_v19, %v2987_v28  ;;  %v3102_v32 = vrot.slane %v329_v26, %v2987_v28 }
  0xc7   : > { %v3107_v36 = vrot.slane %v345_v31, %v2987_v28 }
  0xc8   : > { %4521 = vst [vmem:[#allocation14_spill] sm:$0xff] %v3088_v24  ;;  %4522 = vst [vmem:[#allocation15_spill] sm:$0xff] %v3093_v27 }
  0xc9   : > { %1937 = vrot.lane.b32.xlu1 %v1919_v55, %s2809_s4  ;;  %1941 = vrot.lane.b32.xlu0 %v1921_v59, %s2809_s4  ;;  %4523 = vst [vmem:[#allocation16_spill] sm:$0xff] %v3102_v32  ;;  %4524 = vst [vmem:[#allocation17_spill] sm:$0xff] %v3107_v36 }
  0xcd   : > { %1945 = vrot.lane.b32.xlu1 %v1923_v60, %s2809_s4  ;;  %2187 = vrot.lane.b32.xlu0 %v1917_v50, %s2810_s6  ;;  %v2811_v50 = vmov 1934713408  }
  0xd1   : > { %2191 = vrot.lane.b32.xlu1 %v1919_v55, %s2810_s6  ;;  %2195 = vrot.lane.b32.xlu0 %v1921_v59, %s2810_s6  ;;  %v295_v55 = vunpack.c.l.s4 %v2811_v50  ;;  %v985_v59 = vcombine.low %v3041_v56, %v3047_v61 }
  0xd3   : > { %v296_v2 = vunpack.c.0.s8 %v295_v55  ;;  %v993_v3 = vrot.slane %v985_v59, %v2987_v28 }
  0xd5   : > { %2199 = vrot.lane.b32.xlu1 %v1923_v60, %s2810_s6  ;;  %1465 = vrot.lane.b32.xlu0 %v2975_v22, %s2810_s6  ;;  %v1001_v60 = vcombine.low %v3043_v57, %v3051_v62 }
  0xd9   : > { %1469 = vrot.lane.b32.xlu1 %v2989_v33, %s2810_s6  ;;  %1473 = vrot.lane.b32.xlu0 %v2980_v23, %s2810_s6 }
  0xdd   : > { %1477 = vrot.lane.b32.xlu1 %v2995_v34, %s2810_s6  ;;  %1463 = vrot.lane.b32.xlu0 %v3041_v56, %s2810_s6 }
  0xe1   : > { %1467 = vrot.lane.b32.xlu1 %v3043_v57, %s2810_s6  ;;  %1471 = vrot.lane.b32.xlu0 %v3047_v61, %s2810_s6 }
  0xe5   : > { %1475 = vrot.lane.b32.xlu1 %v3051_v62, %s2810_s6  ;;  %1217 = vrot.lane.b32.xlu0 %v2975_v22, %s2809_s4  ;;  %v3153_v22 = vld [vmem:[#allocation2] sm:$0xff] }
  0xe6   : > { %4525 = vst [vmem:[#allocation18_spill] sm:$0xff] %v3153_v22 }
  0xe9   : > { %1221 = vrot.lane.b32.xlu1 %v2989_v33, %s2809_s4  ;;  %1225 = vrot.lane.b32.xlu0 %v2980_v23, %s2809_s4  ;;  %v3158_v23 = vld [vmem:[#allocation2 + $0x18] sm:$0xff]  ;;  %v3160_v33 = vld [vmem:[#allocation2 + $0x30] sm:$0xff] }
  0xea   : > { %4526 = vst [vmem:[#allocation19_spill] sm:$0xff] %v3158_v23  ;;  %4527 = vst [vmem:[#allocation20_spill] sm:$0xff] %v3160_v33  ;;  %v260_v63 = vcombine.low %v3153_v22, %v3160_v33 }
  0xed   : > { %1229 = vrot.lane.b32.xlu1 %v2995_v34, %s2809_s4  ;;  %1215 = vrot.lane.b32.xlu0 %v3041_v56, %s2809_s4  ;;  %v3162_v34 = vld [vmem:[#allocation2 + $0x48] sm:$0xff]  ;;  %v1009_v56 = vrot.slane %v1001_v60, %v2987_v28 }
  0xee   : > { %4528 = vst [vmem:[#allocation21_spill] sm:$0xff] %v3162_v34  ;;  %v276_v1 = vcombine.low %v3158_v23, %v3162_v34 }
  0xef   : > { %v1018_v9 = vcombine.high %v993_v3, %v1009_v56 }
  0xf1   : > { %1219 = vrot.lane.b32.xlu1 %v3043_v57, %s2809_s4  ;;  %1223 = vrot.lane.b32.xlu0 %v3047_v61, %s2809_s4  ;;  %v268_v61 = vrot.slane %v260_v63, %v2987_v28  ;;  %v284_v57 = vrot.slane %v276_v1, %v2987_v28 }
  0xf5   : > { %1227 = vrot.lane.b32.xlu1 %v3051_v62, %s2809_s4  ;;  %493 = vrot.lane.b32.xlu0 %v476_v15, %s2809_s4  ;;  %v3189_v62 = vsub.s32 %v296_v2, %v2973_v17  ;;  %v292_v17 = vcombine.low %v268_v61, %v284_v57 }
  0xf7   : > { %v1756_v4 = vrot.slane %v1742_v7, %v3189_v62  ;;  %v1765_v7 = vrot.slane %v1757_v13, %v3189_v62  ;;  %v3214_v18 = vrot.slane %v292_v17, %v3189_v62  ;;  %v1100_v19 = vrot.slane %v1086_v51, %v3189_v62 }
  0xf8   : > { %v1833_v26 = vrot.slane %v1825_v48, %v3189_v62  ;;  %v3242_v5 = vrot.slane %v1809_v49, %v3189_v62  ;;  %v3248_v6 = vrot.slane %v1085_v52, %v3189_v62 }
  0xf9   : > { %497 = vrot.lane.b32.xlu1 %v478_v16, %s2809_s4  ;;  %501 = vrot.lane.b32.xlu0 %v480_v12, %s2809_s4  ;;  %4530 = vst [vmem:[#allocation23_spill] sm:$0xff] %v3214_v18  ;;  %v324_v13 = vcombine.high %v3214_v18, %v4472_v0  ;;  %v1118_v59 = vcombine.high %v1100_v19, %v4472_v0 }
  0xfa   : > { %4532 = vst [vmem:[#allocation25_spill] sm:$0xff] %v3242_v5  ;;  %4533 = vst [vmem:[#allocation26_spill] sm:$0xff] %v3248_v6  ;;  %v1841_v31 = vcombine.high %v3242_v5, %v4472_v0  ;;  %v1117_v39 = vcombine.high %v3248_v6, %v4472_v0  ;;  %v1774_v60 = vcombine.high %v1756_v4, %v4472_v0 }
  0xfd   : > { %505 = vrot.lane.b32.xlu1 %v482_v14, %s2809_s4  ;;  %747 = vrot.lane.b32.xlu0 %v476_v15, %s2810_s6 }
 0x101   : > { %751 = vrot.lane.b32.xlu1 %v478_v16, %s2810_s6  ;;  %755 = vrot.lane.b32.xlu0 %v480_v12, %s2810_s6  ;;  %v293_v12 = vcombine.high %v268_v61, %v284_v57  ;;  %v1824_v16 = vrot.slane %v1810_v47, %v3189_v62  ;;  %v3228_v47 = vrot.slane %v1741_v10, %v3189_v62 }
 0x102   : > { %v1017_v10 = vcombine.low %v993_v3, %v1009_v56  ;;  %v1843_v3 = vcombine.high %v1833_v26, %v4472_v0  ;;  %v360_v61 = vcombine.low %v3088_v24, %v3093_v27 }
 0x103   : > { %v3200_v15 = vrot.slane %v293_v12, %v3189_v62  ;;  %4531 = vst [vmem:[#allocation24_spill] sm:$0xff] %v3228_v47  ;;  %v1773_v51 = vcombine.high %v3228_v47, %v4472_v0  ;;  %v1842_v49 = vcombine.high %v1824_v16, %v4472_v0 }
 0x104   : > { %v3259_v40 = vrot.slane %v1017_v10, %v3189_v62 }
 0x105   : > { %759 = vrot.lane.b32.xlu1 %v482_v14, %s2810_s6  ;;  %491 = vrot.lane.b32.xlu0 %v3153_v22, %s2809_s4  ;;  %v1032_v14 = vrot.slane %v1018_v9, %v3189_v62  ;;  %4529 = vst [vmem:[#allocation22_spill] sm:$0xff] %v3200_v15 }
 0x106   : > { %4534 = vst [vmem:[#allocation27_spill] sm:$0xff] %v3259_v40  ;;  %v1049_v52 = vcombine.high %v3259_v40, %v4472_v0 }
 0x107   : > { %v1050_v56 = vcombine.high %v1032_v14, %v4472_v0 }
 0x109   : > { %495 = vrot.lane.b32.xlu1 %v3158_v23, %s2809_s4  ;;  %499 = vrot.lane.b32.xlu0 %v3160_v33, %s2809_s4 }
 0x10d   : > { %503 = vrot.lane.b32.xlu1 %v3162_v34, %s2809_s4  ;;  %745 = vrot.lane.b32.xlu0 %v3153_v22, %s2810_s6 }
 0x111   : > { %749 = vrot.lane.b32.xlu1 %v3158_v23, %s2810_s6  ;;  %753 = vrot.lane.b32.xlu0 %v3160_v33, %s2810_s6 }
 0x115   : > { %757 = vrot.lane.b32.xlu1 %v3162_v34, %s2810_s6  ;;  %1850 = vrot.lane.b32.xlu0 %v1756_v4, %s2812_s7 }
 0x119   : > { %1126 = vrot.lane.b32.xlu0 %v1032_v14, %s2812_s7  ;;  %401 = vrot.lane.b32.xlu1 %v3200_v15, %s2812_s7  ;;  %v3305_v14 = vrot.slane %v1101_v53, %v3189_v62 }
 0x11d   : > { %1858 = vrot.lane.b32.xlu0 %v1765_v7, %s2813_s8  ;;  %1878 = vrot.lane.b32.xlu1 %v1824_v16, %s2812_s7  ;;  %v1775_v16 = vcombine.high %v1765_v7, %v4472_v0 }
 0x121   : > { %1154 = vrot.lane.b32.xlu1 %v1100_v19, %s2812_s7  ;;  %397 = vrot.lane.b32.xlu0 %v324_v13, %s2814_s17  ;;  %v3309_v19 = vrot.slane %v360_v61, %v3189_v62 }
 0x123   : > { %4535 = vst [vmem:[#allocation28_spill] sm:$0xff] %v3309_v19 }
 0x125   : > { %1886 = vrot.lane.b32.xlu1 %v1833_v26, %s2813_s8  ;;  %1846 = vrot.lane.b32.xlu0 %v1773_v51, %s2814_s17 }
 0x127   : > { %v3252_v48 = vpop.permute.xlu0 %1935 }
 0x129   : > { %1874 = vrot.lane.b32.xlu1 %v1841_v31, %s2814_s17  ;;  %1150 = vrot.lane.b32.xlu0 %v1117_v39, %s2814_s17  ;;  %v3332_v31 = vrot.slane %v1826_v54, %v3189_v62  ;;  %v392_v39 = vcombine.high %v3309_v19, %v4472_v0 }
 0x12b   : > { %v3263_v43 = vpop.permute.xlu1 %1939  ;;  %v3265_v44 = vpop.permute.xlu0 %1943  ;;  %4536 = vst [vmem:[#allocation29_spill] sm:$0xff] %v3332_v31 }
 0x12c   : > { %v2025_v57 = vcombine.low %v3252_v48, %v3265_v44 }
 0x12d   : > { %1882 = vrot.lane.b32.xlu1 %v1842_v49, %s2815_s19  ;;  %1122 = vrot.lane.b32.xlu0 %v1049_v52, %s2814_s17  ;;  %v2026_v52 = vcombine.high %v3252_v48, %v3265_v44 }
 0x12e   : > { %v3313_v26 = vrot.slane %v2025_v57, %v2987_v28 }
 0x12f   : > { %v3272_v50 = vpop.permute.xlu1 %1947  ;;  %v3274_v55 = vpop.permute.xlu0 %2189  ;;  %v3419_v6 = vrot.slane %v2026_v52, %v2987_v28 }
 0x130   : > { %v2041_v63 = vcombine.low %v3263_v43, %v3272_v50  ;;  %v2042_v35 = vcombine.high %v3263_v43, %v3272_v50 }
 0x131   : > { %1158 = vrot.lane.b32.xlu1 %v1118_v59, %s2815_s19  ;;  %1854 = vrot.lane.b32.xlu0 %v1774_v60, %s2815_s19 }
 0x132   : > { %v3297_v9 = vrot.slane %v2041_v63, %v2987_v28  ;;  %v3411_v43 = vrot.slane %v2042_v35, %v2987_v28 }
 0x133   : > { %v3282_v1 = vpop.permute.xlu1 %2193  ;;  %v3284_v2 = vpop.permute.xlu0 %2197 }
 0x134   : > { %v2279_v4 = vcombine.low %v3274_v55, %v3284_v2  ;;  %v2058_v49 = vcombine.high %v3313_v26, %v3297_v9  ;;  %v2280_v50 = vcombine.high %v3274_v55, %v3284_v2  ;;  %v2073_v52 = vcombine.low %v3419_v6, %v3411_v43 }
 0x135   : > { %1890 = vrot.lane.b32.xlu1 %v1843_v3, %s2816_s20  ;;  %1130 = vrot.lane.b32.xlu0 %v1050_v56, %s2815_s19 }
 0x136   : > { %v3319_v51 = vrot.slane %v2279_v4, %v2987_v28  ;;  %v3348_v59 = vrot.slane %v2058_v49, %v3189_v62 }
 0x137   : > { %v2202_v12 = vpop.permute.xlu1 %2201  ;;  %v3299_v17 = vpop.permute.xlu0 %1933 }
 0x138   : > { %v2295_v13 = vcombine.low %v3282_v1, %v2202_v12  ;;  %v2296_v0 = vcombine.high %v3282_v1, %v2202_v12  ;;  %v3428_v12 = vrot.slane %v2280_v50, %v2987_v28 }
 0x139   : > { %1162 = vrot.lane.b32.xlu1 %v3305_v14, %s2813_s8  ;;  %1862 = vrot.lane.b32.xlu0 %v1775_v16, %s2816_s20 }
 0x13a   : > { %v3322_v53 = vrot.slane %v2295_v13, %v2987_v28  ;;  %v3422_v48 = vrot.slane %v2296_v0, %v2987_v28 }
 0x13b   : > { %v3324_v7 = vpop.permute.xlu1 %1937  ;;  %v3326_v10 = vpop.permute.xlu0 %1941 }
 0x13c   : > { %v1957_v41 = vcombine.low %v3299_v17, %v3326_v10  ;;  %v2312_v60 = vcombine.high %v3319_v51, %v3322_v53  ;;  %v1958_v0 = vcombine.high %v3299_v17, %v3326_v10 }
 0x13d   : > { %1894 = vrot.lane.b32.xlu1 %v3332_v31, %s2817_s22  ;;  %425 = vrot.lane.b32.xlu0 %v392_v39, %s2814_s17 }
 0x13e   : > { %v3356_v3 = vrot.slane %v1957_v41, %v2987_v28  ;;  %v3366_v4 = vrot.slane %v2312_v60, %v3189_v62 }
 0x13f   : > { %v1946_v42 = vpop.permute.xlu1 %1945  ;;  %v3345_v54 = vpop.permute.xlu0 %2187 }
 0x140   : > { %v1973_v63 = vcombine.low %v3324_v7, %v1946_v42  ;;  %v1974_v35 = vcombine.high %v3324_v7, %v1946_v42  ;;  %v2327_v7 = vcombine.low %v3428_v12, %v3422_v48 }
 0x141   : > { %2126 = vrot.lane.b32.xlu1 %v3348_v59, %s2812_s7 }
 0x142   : > { %v3359_v56 = vrot.slane %v1973_v63, %v2987_v28 }
 0x143   : > { %v3361_v61 = vpop.permute.xlu1 %2191  ;;  %v3363_v57 = vpop.permute.xlu0 %2195 }
 0x144   : > { %v1990_v16 = vcombine.high %v3356_v3, %v3359_v56  ;;  %v2211_v13 = vcombine.low %v3345_v54, %v3363_v57 }
 0x145   : > { %2380 = vrot.lane.b32.xlu1 %v3366_v4, %s2812_s7 }
 0x146   : > { %v3375_v39 = vrot.slane %v1990_v16, %v3189_v62  ;;  %v3383_v60 = vrot.slane %v2211_v13, %v2987_v28 }
 0x147   : > { %v2200_v49 = vpop.permute.xlu1 %2199  ;;  %v3377_v41 = vpop.permute.xlu0 %1465 }
 0x148   : > { %v2227_v63 = vcombine.low %v3361_v61, %v2200_v49  ;;  %2098 = vrot.lane.b32.xlu0 %v3375_v39, %s2812_s7 }
 0x14a   : > { %v3386_v38 = vrot.slane %v2227_v63, %v2987_v28 }
 0x14b   : > { %v3388_v37 = vpop.permute.xlu1 %1469  ;;  %v3390_v30 = vpop.permute.xlu0 %1473 }
 0x14c   : > { %v2244_v16 = vcombine.high %v3383_v60, %v3386_v38  ;;  %v1555_v13 = vcombine.low %v3377_v41, %v3390_v30  ;;  %v1556_v34 = vcombine.high %v3377_v41, %v3390_v30 }
 0x14e   : > { %v3395_v58 = vrot.slane %v2244_v16, %v3189_v62  ;;  %v3416_v19 = vrot.slane %v1555_v13, %v2987_v28 }
 0x14f   : > { %v1478_v25 = vpop.permute.xlu1 %1477  ;;  %v1464_v29 = vpop.permute.xlu0 %1463 }
 0x150   : > { %v1571_v63 = vcombine.low %v3388_v37, %v1478_v25  ;;  %2352 = vrot.lane.b32.xlu0 %v3395_v58, %s2812_s7 }
 0x152   : > { %v3408_v16 = vrot.slane %v1571_v63, %v2987_v28 }
 0x153   : > { %v1468_v18 = vpop.permute.xlu1 %1467  ;;  %v1472_v40 = vpop.permute.xlu0 %1471 }
 0x154   : > { %v1588_v44 = vcombine.high %v3416_v19, %v3408_v16  ;;  %v1488_v1 = vcombine.high %v1464_v29, %v1472_v40  ;;  %v1487_v55 = vcombine.low %v1464_v29, %v1472_v40  ;;  %v3442_v29 = vrot.slane %v1974_v35, %v2987_v28 }
 0x155   : > { %v3461_v35 = vrot.slane %v1958_v0, %v2987_v28  ;;  %v1572_v0 = vcombine.high %v3388_v37, %v1478_v25 }
 0x156   : > { %v3431_v63 = vrot.slane %v1588_v44, %v3189_v62  ;;  %v3445_v40 = vrot.slane %v1488_v1, %v2987_v28  ;;  %v3455_v17 = vrot.slane %v1487_v55, %v2987_v28  ;;  %v3472_v1 = vrot.slane %v2327_v7, %v3189_v62 }
 0x157   : > { %v1476_v2 = vpop.permute.xlu1 %1475  ;;  %v1218_v13 = vpop.permute.xlu0 %1217  ;;  %v2005_v55 = vcombine.low %v3461_v35, %v3442_v29 }
 0x158   : > { %v1503_v47 = vcombine.low %v1468_v18, %v1476_v2  ;;  %v1504_v5 = vcombine.high %v1468_v18, %v1476_v2  ;;  %1656 = vrot.lane.b32.xlu1 %v3431_v63, %s2812_s7  ;;  %4537 = vst [vmem:[#allocation30_spill] sm:$0xff] %v3445_v40  ;;  %v2228_v18 = vcombine.high %v3361_v61, %v2200_v49 }
 0x159   : > { %v3458_v2 = vrot.slane %v2073_v52, %v3189_v62 }
 0x15a   : > { %v3448_v42 = vrot.slane %v1503_v47, %v2987_v28  ;;  %v3451_v50 = vrot.slane %v1504_v5, %v2987_v28  ;;  %v2212_v5 = vcombine.high %v3345_v54, %v3363_v57  ;;  %v3477_v52 = vrot.slane %v2228_v18, %v2987_v28 }
 0x15b   : > { %v1222_v10 = vpop.permute.xlu1 %1221  ;;  %v1226_v44 = vpop.permute.xlu0 %1225  ;;  %v3504_v18 = vrot.slane %v1572_v0, %v2987_v28 }
 0x15c   : > { %4538 = vst [vmem:[#allocation31_spill] sm:$0xff] %v3451_v50  ;;  %2134 = vrot.lane.b32.xlu1 %v3458_v2, %s2813_s8  ;;  %v1520_v61 = vcombine.high %v3455_v17, %v3448_v42  ;;  %v1308_v49 = vcombine.high %v1218_v13, %v1226_v44  ;;  %v1307_v47 = vcombine.low %v1218_v13, %v1226_v44 }
 0x15d   : > { %v3486_v7 = vrot.slane %v2212_v5, %v2987_v28  ;;  %v3514_v44 = vrot.slane %v2005_v55, %v3189_v62  ;;  %v3521_v5 = vrot.slane %v1556_v34, %v2987_v28  ;;  %v1535_v24 = vcombine.low %v3445_v40, %v3451_v50 }
 0x15e   : > { %v3483_v36 = vrot.slane %v1520_v61, %v3189_v62  ;;  %v3495_v25 = vrot.slane %v1308_v49, %v2987_v28  ;;  %v3507_v30 = vrot.slane %v1307_v47, %v2987_v28 }
 0x15f   : > { %v1230_v54 = vpop.permute.xlu1 %1229  ;;  %v3480_v57 = vpop.permute.xlu0 %1215  ;;  %v1603_v34 = vcombine.low %v3521_v5, %v3504_v18  ;;  %v3602_v8 = vrot.slane %v1535_v24, %v3189_v62  ;;  %v2260_v50 = vcombine.high %v3486_v7, %v3477_v52 }
 0x160   : > { %v1323_v32 = vcombine.low %v1222_v10, %v1230_v54  ;;  %v1324_v23 = vcombine.high %v1222_v10, %v1230_v54  ;;  %2388 = vrot.lane.b32.xlu1 %v3472_v1, %s2813_s8  ;;  %1628 = vrot.lane.b32.xlu0 %v3483_v36, %s2812_s7  ;;  %4539 = vst [vmem:[#allocation32_spill] sm:$0xff] %v3495_v25 }
 0x161   : > { %v3560_v46 = vrot.slane %v1603_v34, %v3189_v62  ;;  %v2328_v34 = vcombine.high %v3428_v12, %v3422_v48 }
 0x162   : > { %v3498_v37 = vrot.slane %v1323_v32, %v2987_v28  ;;  %v3501_v13 = vrot.slane %v1324_v23, %v2987_v28  ;;  %v2259_v32 = vcombine.low %v3486_v7, %v3477_v52  ;;  %v3647_v7 = vrot.slane %v2260_v50, %v3189_v62 }
 0x163   : > { %v3509_v41 = vpop.permute.xlu1 %1219  ;;  %v3511_v10 = vpop.permute.xlu0 %1223  ;;  %v3599_v12 = vrot.slane %v2328_v34, %v3189_v62 }
 0x164   : > { %4540 = vst [vmem:[#allocation33_spill] sm:$0xff] %v3501_v13  ;;  %2106 = vrot.lane.b32.xlu0 %v3514_v44, %s2813_s8  ;;  %v1340_v47 = vcombine.high %v3507_v30, %v3498_v37  ;;  %v1239_v61 = vcombine.low %v3480_v57, %v3511_v10  ;;  %v3537_v54 = vrot.slane %v2259_v32, %v3189_v62 }
 0x166   : > { %v3534_v0 = vrot.slane %v1340_v47, %v3189_v62  ;;  %v2074_v47 = vcombine.high %v3419_v6, %v3411_v43  ;;  %v3553_v32 = vrot.slane %v1239_v61, %v2987_v28 }
 0x167   : > { %v3529_v49 = vpop.permute.xlu1 %1227  ;;  %v3531_v55 = vpop.permute.xlu0 %493 }
 0x168   : > { %4541 = vst [vmem:[#allocation34_spill] sm:$0xff] %v3531_v55  ;;  %v1255_v23 = vcombine.low %v3509_v41, %v3529_v49  ;;  %1408 = vrot.lane.b32.xlu1 %v3534_v0, %s2812_s7  ;;  %2360 = vrot.lane.b32.xlu0 %v3537_v54, %s2813_s8  ;;  %v3567_v45 = vrot.slane %v2074_v47, %v3189_v62 }
 0x16a   : > { %v3548_v22 = vrot.slane %v1255_v23, %v2987_v28 }
 0x16b   : > { %v3555_v33 = vpop.permute.xlu1 %497  ;;  %v3557_v15 = vpop.permute.xlu0 %501 }
 0x16c   : > { %4542 = vst [vmem:[#allocation35_spill] sm:$0xff] %v3555_v33  ;;  %4543 = vst [vmem:[#allocation36_spill] sm:$0xff] %v3557_v15  ;;  %1664 = vrot.lane.b32.xlu1 %v3560_v46, %s2813_s8  ;;  %v1272_v23 = vcombine.high %v3553_v32, %v3548_v22  ;;  %v583_v6 = vcombine.low %v3531_v55, %v3557_v15  ;;  %v2006_v55 = vcombine.high %v3461_v35, %v3442_v29 }
 0x16e   : > { %v3576_v27 = vrot.slane %v1272_v23, %v3189_v62  ;;  %v3592_v23 = vrot.slane %v583_v6, %v2987_v28  ;;  %v3624_v35 = vrot.slane %v2006_v55, %v3189_v62 }
 0x16f   : > { %v3571_v43 = vpop.permute.xlu1 %505  ;;  %v3573_v61 = vpop.permute.xlu0 %747 }
 0x170   : > { %4544 = vst [vmem:[#allocation37_spill] sm:$0xff] %v3573_v61  ;;  %v599_v47 = vcombine.low %v3555_v33, %v3571_v43  ;;  %2142 = vrot.lane.b32.xlu1 %v3567_v45, %s2817_s22  ;;  %1380 = vrot.lane.b32.xlu0 %v3576_v27, %s2812_s7 }
 0x172   : > { %v3589_v31 = vrot.slane %v599_v47, %v2987_v28  ;;  %v2057_v47 = vcombine.low %v3313_v26, %v3297_v9  ;;  %v1989_v9 = vcombine.low %v3356_v3, %v3359_v56  ;;  %v2243_v56 = vcombine.low %v3383_v60, %v3386_v38 }
 0x173   : > { %v3594_v11 = vpop.permute.xlu1 %751  ;;  %v3596_v48 = vpop.permute.xlu0 %755 }
 0x174   : > { %4545 = vst [vmem:[#allocation38_spill] sm:$0xff] %v3594_v11  ;;  %4546 = vst [vmem:[#allocation39_spill] sm:$0xff] %v3596_v48  ;;  %2396 = vrot.lane.b32.xlu1 %v3599_v12, %s2817_s22  ;;  %1636 = vrot.lane.b32.xlu0 %v3602_v8, %s2813_s8  ;;  %v616_v6 = vcombine.high %v3592_v23, %v3589_v31  ;;  %v837_v34 = vcombine.low %v3573_v61, %v3596_v48 }
 0x175   : > { %v3650_v61 = vrot.slane %v2057_v47, %v3189_v62 }
 0x176   : > { %v3621_v29 = vrot.slane %v616_v6, %v3189_v62  ;;  %v3640_v55 = vrot.slane %v837_v34, %v2987_v28  ;;  %v1355_v34 = vcombine.low %v3495_v25, %v3501_v13 }
 0x177   : > { %v3616_v24 = vpop.permute.xlu1 %759  ;;  %v3618_v15 = vpop.permute.xlu0 %491  ;;  %4549 = vst [vmem:[#allocation42_spill] sm:$0xff] %v3650_v61 }
 0x178   : > { %4547 = vst [vmem:[#allocation40_spill] sm:$0xff] %v3616_v24  ;;  %4548 = vst [vmem:[#allocation41_spill] sm:$0xff] %v3618_v15  ;;  %v853_v40 = vcombine.low %v3594_v11, %v3616_v24  ;;  %684 = vrot.lane.b32.xlu1 %v3621_v29, %s2812_s7  ;;  %2114 = vrot.lane.b32.xlu0 %v3624_v35, %s2817_s22  ;;  %v4551_v11 = vmov 0.0  }
 0x179   : > { %v2089_v24 = vcombine.high %v3650_v61, %v4551_v11  ;;  %v1604_v61 = vcombine.high %v3521_v5, %v3504_v18 }
 0x17a   : > { %v3637_v26 = vrot.slane %v853_v40, %v2987_v28  ;;  %v3659_v40 = vrot.slane %v1989_v9, %v3189_v62  ;;  %v3682_v9 = vrot.slane %v2243_v56, %v3189_v62 }
 0x17b   : > { %v3642_v6 = vpop.permute.xlu1 %495  ;;  %v3644_v52 = vpop.permute.xlu0 %499  ;;  %v3713_v5 = vrot.slane %v1604_v61, %v3189_v62  ;;  %v4554_v61 = vcombine.low %v3319_v51, %v3322_v53  ;;  %v2090_v51 = vcombine.high %v3348_v59, %v4551_v11  ;;  %v2022_v53 = vcombine.high %v3375_v39, %v4551_v11 }
 0x17c   : > { %2368 = vrot.lane.b32.xlu0 %v3647_v7, %s2817_s22  ;;  %v870_v3 = vcombine.high %v3640_v55, %v3637_v26  ;;  %4550 = vst [vmem:[#allocation43_spill] sm:$0xff] %v3659_v40  ;;  %v515_v38 = vcombine.low %v3618_v15, %v3644_v52  ;;  %v2021_v60 = vcombine.high %v3659_v40, %v4551_v11 }
 0x17d   : > { %v3694_v15 = vrot.slane %v1355_v34, %v3189_v62  ;;  %v2276_v59 = vcombine.high %v3395_v58, %v4551_v11 }
 0x17e   : > { %v3668_v47 = vrot.slane %v870_v3, %v3189_v62  ;;  %v1587_v3 = vcombine.low %v3416_v19, %v3408_v16  ;;  %v2275_v19 = vcombine.high %v3682_v9, %v4551_v11 }
 0x17f   : > { %v3663_v50 = vpop.permute.xlu1 %503  ;;  %v3665_v48 = vpop.permute.xlu0 %745 }
 0x180   : > { %v531_v33 = vcombine.low %v3642_v6, %v3663_v50  ;;  %938 = vrot.lane.b32.xlu1 %v3668_v47, %s2812_s7  ;;  %2122 = vrot.lane.b32.xlu0 %v2089_v24, %s2814_s17  ;;  %v3697_v24 = vrot.slane %v515_v38, %v2987_v28  ;;  %v3716_v56 = vrot.slane %v1587_v3, %v3189_v62 }
 0x182   : > { %v3689_v13 = vrot.slane %v531_v33, %v2987_v28  ;;  %v1519_v33 = vcombine.low %v3455_v17, %v3448_v42  ;;  %v1619_v17 = vcombine.high %v3716_v56, %v4551_v11 }
 0x183   : > { %v3691_v25 = vpop.permute.xlu1 %749  ;;  %v3699_v40 = vpop.permute.xlu0 %753 }
 0x184   : > { %1416 = vrot.lane.b32.xlu1 %v3694_v15, %s2813_s8  ;;  %2094 = vrot.lane.b32.xlu0 %v2021_v60, %s2814_s17  ;;  %v548_v16 = vcombine.high %v3697_v24, %v3689_v13  ;;  %v3734_v60 = vrot.slane %v4554_v61, %v3189_v62  ;;  %v3737_v3 = vrot.slane %v1519_v33, %v3189_v62 }
 0x185   : > { %v1339_v33 = vcombine.low %v3507_v30, %v3498_v37 }
 0x186   : > { %v3726_v42 = vrot.slane %v548_v16, %v3189_v62  ;;  %v2343_v16 = vcombine.high %v3734_v60, %v4551_v11 }
 0x187   : > { %v3710_v18 = vpop.permute.xlu1 %757  ;;  %v3721_v34 = vpop.permute.xlu0 %1850  ;;  %v3773_v37 = vrot.slane %v1339_v33, %v3189_v62  ;;  %v2091_v33 = vcombine.high %v3458_v2, %v4551_v11  ;;  %v2277_v2 = vcombine.high %v3537_v54, %v4551_v11 }
 0x188   : > { %1672 = vrot.lane.b32.xlu1 %v3713_v5, %s2817_s22  ;;  %2348 = vrot.lane.b32.xlu0 %v2275_v19, %s2814_s17  ;;  %4552 = vst [vmem:[#allocation44_spill] sm:$0xff] %v3721_v34 }
 0x18b   : > { %v3723_v38 = vpop.permute.xlu1 %401  ;;  %v3748_v34 = vpop.permute.xlu0 %1126 }
 0x18c   : > { %4553 = vst [vmem:[#allocation45_spill] sm:$0xff] %v3723_v38  ;;  %656 = vrot.lane.b32.xlu1 %v3726_v42, %s2812_s7  ;;  %1652 = vrot.lane.b32.xlu0 %v1619_v17, %s2814_s17  ;;  %v1551_v38 = vcombine.high %v3737_v3, %v4551_v11  ;;  %4556 = vst [vmem:[#allocation47_spill] sm:$0xff] %v3748_v34  ;;  %v1271_v17 = vcombine.low %v3553_v32, %v3548_v22 }
 0x18e   : > { %v3776_v22 = vrot.slane %v1271_v17, %v3189_v62  ;;  %v2023_v17 = vcombine.high %v3514_v44, %v4551_v11  ;;  %v547_v44 = vcombine.low %v3697_v24, %v3689_v13 }
 0x18f   : > { %v3742_v19 = vpop.permute.xlu1 %1878 }
 0x190   : > { %4555 = vst [vmem:[#allocation46_spill] sm:$0xff] %v3742_v19  ;;  %2376 = vrot.lane.b32.xlu1 %v2343_v16, %s2814_s17  ;;  %1624 = vrot.lane.b32.xlu0 %v1551_v38, %s2814_s17  ;;  %v2344_v38 = vcombine.high %v3366_v4, %v4551_v11  ;;  %v3768_v16 = vpop.permute.xlu0 %1858  ;;  %v1371_v4 = vcombine.high %v3773_v37, %v4551_v11 }
 0x191   : > { %4558 = vst [vmem:[#allocation49_spill] sm:$0xff] %v3768_v16  ;;  %v1303_v58 = vcombine.high %v3776_v22, %v4551_v11  ;;  %v3839_v24 = vrot.slane %v547_v44, %v3189_v62 }
 0x193   : > { %v3760_v61 = vpop.permute.xlu1 %1154 }
 0x194   : > { %4557 = vst [vmem:[#allocation48_spill] sm:$0xff] %v3760_v61  ;;  %2130 = vrot.lane.b32.xlu1 %v2090_v51, %s2815_s19  ;;  %2102 = vrot.lane.b32.xlu0 %v2022_v53, %s2815_s19  ;;  %v3784_v30 = vpop.permute.xlu0 %397  ;;  %v1620_v51 = vcombine.high %v3431_v63, %v4551_v11  ;;  %v1552_v53 = vcombine.high %v3483_v36, %v4551_v11 }
 0x195   : > { %4560 = vst [vmem:[#allocation51_spill] sm:$0xff] %v3784_v30  ;;  %v785_v63 = vcombine.low %v3691_v25, %v3710_v18  ;;  %v4581_v30 = vld [vmem:[#allocation34_spill] sm:$0xff] }
 0x197   : > { %v3770_v39 = vpop.permute.xlu1 %1886 }
 0x198   : > { %4559 = vst [vmem:[#allocation50_spill] sm:$0xff] %v3770_v39  ;;  %2384 = vrot.lane.b32.xlu1 %v2344_v38, %s2815_s19  ;;  %2356 = vrot.lane.b32.xlu0 %v2276_v59, %s2815_s19  ;;  %v615_v38 = vcombine.low %v3592_v23, %v3589_v31  ;;  %v869_v59 = vcombine.low %v3640_v55, %v3637_v26  ;;  %v3806_v36 = vpop.permute.xlu0 %1846 }
 0x199   : > { %4562 = vst [vmem:[#allocation53_spill] sm:$0xff] %v3806_v36  ;;  %v2345_v31 = vcombine.high %v3472_v1, %v4551_v11  ;;  %v793_v23 = vrot.slane %v785_v63, %v2987_v28  ;;  %v579_v63 = vcombine.high %v3839_v24, %v4551_v11 }
 0x19a   : > { %v3822_v26 = vrot.slane %v869_v59, %v3189_v62  ;;  %v3825_v55 = vrot.slane %v615_v38, %v3189_v62 }
 0x19b   : > { %v3786_v32 = vpop.permute.xlu1 %1874 }
 0x19c   : > { %4561 = vst [vmem:[#allocation52_spill] sm:$0xff] %v3786_v32  ;;  %1404 = vrot.lane.b32.xlu1 %v1371_v4, %s2814_s17  ;;  %1376 = vrot.lane.b32.xlu0 %v1303_v58, %s2814_s17  ;;  %v769_v58 = vcombine.low %v3665_v48, %v3699_v40  ;;  %v901_v13 = vcombine.high %v3822_v26, %v4551_v11 }
 0x19d   : > { %v647_v54 = vcombine.high %v3825_v55, %v4551_v11 }
 0x19f   : > { %v3808_v4 = vpop.permute.xlu1 %1882 }
 0x1a0   : > { %1660 = vrot.lane.b32.xlu1 %v1620_v51, %s2815_s19  ;;  %1632 = vrot.lane.b32.xlu0 %v1552_v53, %s2815_s19  ;;  %4563 = vst [vmem:[#allocation54_spill] sm:$0xff] %v3808_v4  ;;  %v777_v51 = vrot.slane %v769_v58, %v2987_v28  ;;  %v3828_v53 = vpop.permute.xlu0 %1150  ;;  %v4607_v4 = vld [vmem:[#allocation19_spill] sm:$0xff] }
 0x1a1   : > { %4564 = vst [vmem:[#allocation55_spill] sm:$0xff] %v3828_v53 }
 0x1a2   : > { %v801_v1 = vcombine.low %v777_v51, %v793_v23 }
 0x1a4   : > { %2138 = vrot.lane.b32.xlu1 %v2091_v33, %s2816_s20  ;;  %2110 = vrot.lane.b32.xlu0 %v2023_v17, %s2816_s20  ;;  %v3830_v33 = vpop.permute.xlu1 %1158  ;;  %v1372_v17 = vcombine.high %v3534_v0, %v4551_v11  ;;  %v3845_v38 = vpop.permute.xlu0 %1122  ;;  %v3852_v58 = vrot.slane %v801_v1, %v3189_v62  ;;  %v2092_v1 = vcombine.high %v3567_v45, %v4551_v11 }
 0x1a5   : > { %4565 = vst [vmem:[#allocation56_spill] sm:$0xff] %v3830_v33  ;;  %4566 = vst [vmem:[#allocation57_spill] sm:$0xff] %v3845_v38  ;;  %v1256_v45 = vcombine.high %v3509_v41, %v3529_v49  ;;  %v648_v49 = vcombine.high %v3621_v29, %v4551_v11  ;;  %v4575_v29 = vcombine.low %v3082_v20, %v3085_v21 }
 0x1a6   : > { %4568 = vst [vmem:[#allocation59_spill] sm:$0xff] %v3852_v58  ;;  %v833_v0 = vcombine.high %v3852_v58, %v4551_v11 }
 0x1a7   : > { %v3897_v41 = vrot.slane %v1256_v45, %v2987_v28 }
 0x1a8   : > { %2392 = vrot.lane.b32.xlu1 %v2345_v31, %s2816_s20  ;;  %2364 = vrot.lane.b32.xlu0 %v2277_v2, %s2816_s20  ;;  %v3847_v59 = vpop.permute.xlu1 %1890  ;;  %v1621_v31 = vcombine.high %v3560_v46, %v4551_v11  ;;  %v3860_v2 = vpop.permute.xlu0 %1854  ;;  %v2346_v46 = vcombine.high %v3599_v12, %v4551_v11  ;;  %v2278_v12 = vcombine.high %v3647_v7, %v4551_v11 }
 0x1a9   : > { %4567 = vst [vmem:[#allocation58_spill] sm:$0xff] %v3847_v59  ;;  %4569 = vst [vmem:[#allocation60_spill] sm:$0xff] %v3860_v2 }
 0x1ac   : > { %934 = vrot.lane.b32.xlu1 %v901_v13, %s2814_s17  ;;  %680 = vrot.lane.b32.xlu0 %v647_v54, %s2814_s17  ;;  %v3862_v44 = vpop.permute.xlu1 %1162  ;;  %v1304_v13 = vcombine.high %v3576_v27, %v4551_v11  ;;  %v1553_v54 = vcombine.high %v3602_v8, %v4551_v11  ;;  %v2024_v27 = vcombine.high %v3624_v35, %v4551_v11 }
 0x1ad   : > { %4570 = vst [vmem:[#allocation61_spill] sm:$0xff] %v3862_v44  ;;  %v1240_v8 = vcombine.high %v3480_v57, %v3511_v10  ;;  %v902_v10 = vcombine.high %v3668_v47, %v4551_v11  ;;  %v4588_v44 = vld [vmem:[#allocation37_spill] sm:$0xff] }
 0x1af   : > { %v3903_v7 = vrot.slane %v1240_v8, %v2987_v28  ;;  %v4577_v8 = vld [vmem:[#allocation30_spill] sm:$0xff] }
 0x1b0   : > { %1412 = vrot.lane.b32.xlu1 %v1372_v17, %s2815_s19  ;;  %652 = vrot.lane.b32.xlu0 %v579_v63, %s2814_s17  ;;  %v3876_v17 = vpop.permute.xlu0 %1130  ;;  %v3878_v63 = vpop.permute.xlu1 %1894 }
 0x1b1   : > { %4571 = vst [vmem:[#allocation62_spill] sm:$0xff] %v3876_v17  ;;  %4572 = vst [vmem:[#allocation63_spill] sm:$0xff] %v3878_v63  ;;  %v1287_v57 = vcombine.low %v3903_v7, %v3897_v41 }
 0x1b3   : > { %v1295_v47 = vrot.slane %v1287_v57, %v3189_v62 }
 0x1b4   : > { %1668 = vrot.lane.b32.xlu1 %v1621_v31, %s2816_s20  ;;  %906 = vrot.lane.b32.xlu0 %v833_v0, %s2814_s17  ;;  %v802_v31 = vcombine.high %v777_v51, %v793_v23  ;;  %v3890_v0 = vpop.permute.xlu0 %1862  ;;  %s2737_s17 = scalar_lea.vmem %s2536_s23, 256 }
 0x1b5   : > { %4573 = vst [vmem:[#allocation64_spill] sm:$0xff] %v3890_v0  ;;  %v4595_v0 = vld [vmem:[#allocation11_spill] sm:$0xff]  ;;  %v1305_v63 = vcombine.high %v1295_v47, %v4551_v11  ;;  %p2738_p11 = scmp.ne.s32.totalorder %s2536_s23, %s2737_s17 }
 0x1b6   : > { %v816_v35 = vrot.slane %v802_v31, %v3189_v62 }
 0x1b7   : > { %p2739_p13 = pnand %p2738_p11, %p4644_p12 }
 0x1b8   : > { %2146 = vrot.lane.b32.xlu1 %v2092_v1, %s2818_s26  ;;  %1384 = vrot.lane.b32.xlu0 %v1304_v13, %s2815_s19  ;;  %v3892_v1 = vpop.permute.xlu1 %2126  ;;  %v3911_v23 = vpop.permute.xlu0 %425  ;;  %v1041_v13 = vrot.slane %v4575_v29, %v3189_v62  ;;  %v1373_v29 = vcombine.high %v3694_v15, %v4551_v11  ;;  %v4585_v15 = vld [vmem:[#allocation13_spill] sm:$0xff] }
 0x1b9   : > { %4574 = vst [vmem:[#allocation65_spill] sm:$0xff] %v3911_v23  ;;  %v4580_v23 = vld [vmem:[#allocation36_spill] sm:$0xff]  ;;  %p2740_p4 = pneg %p2739_p13 }
 0x1ba   : > { %v584_v57 = vcombine.high %v4581_v30, %v4580_v23  ;;  %v1622_v30 = vcombine.high %v3713_v5, %v4551_v11 }
 0x1bc   : > { %2400 = vrot.lane.b32.xlu1 %v2346_v46, %s2818_s26  ;;  %1640 = vrot.lane.b32.xlu0 %v1553_v54, %s2816_s20  ;;  %v3913_v51 = vpop.permute.xlu1 %2380  ;;  %v1119_v46 = vcombine.high %v3305_v14, %v4551_v11  ;;  %v3923_v54 = vpop.permute.xlu0 %2098  ;;  %v3960_v23 = vrot.slane %v584_v57, %v2987_v28  ;;  %v4590_v57 = vld [vmem:[#allocation14_spill] sm:$0xff] }
 0x1c0   : > { %2372 = vrot.lane.b32.xlu1 %v2278_v12, %s2818_s26  ;;  %2118 = vrot.lane.b32.xlu0 %v2024_v27, %s2818_s26  ;;  %v4576_v27 = vld [vmem:[#allocation35_spill] sm:$0xff] }
 0x1c1   : > { %v600_v12 = vcombine.high %v4576_v27, %v3571_v43  ;;  %v4583_v27 = vld [vmem:[#allocation38_spill] sm:$0xff] }
 0x1c2   : > { %v3932_v31 = vpop.permute.xlu0 %2352 }
 0x1c3   : > { %v3947_v43 = vrot.slane %v600_v12, %v2987_v28 }
 0x1c4   : > { %910 = vrot.lane.b32.xlu1 %v816_v35, %s2812_s7  ;;  %688 = vrot.lane.b32.xlu0 %v648_v49, %s2815_s19  ;;  %v4578_v49 = vld [vmem:[#allocation31_spill] sm:$0xff] }
 0x1c8   : > { %1134 = vrot.lane.b32.xlu1 %v1041_v13, %s2813_s8  ;;  %942 = vrot.lane.b32.xlu0 %v902_v10, %s2815_s19  ;;  %v4579_v10 = vcombine.high %v4577_v8, %v4578_v49  ;;  %v4584_v49 = vld [vmem:[#allocation12_spill] sm:$0xff] }
 0x1ca   : > { %v3925_v45 = vpop.permute.xlu1 %1656  ;;  %v1550_v14 = vrot.slane %v4579_v10, %v3189_v62  ;;  %v4586_v10 = vcombine.high %v4584_v49, %v4585_v15  ;;  %v631_v49 = vcombine.low %v3960_v23, %v3947_v43 }
 0x1cc   : > { %1388 = vrot.lane.b32.xlu1 %v1295_v47, %s2813_s8  ;;  %1166 = vrot.lane.b32.xlu0 %v1119_v46, %s2816_s20  ;;  %v4582_v46 = vld [vmem:[#allocation40_spill] sm:$0xff]  ;;  %v1772_v38 = vrot.slane %v4586_v10, %v3189_v62  ;;  %v4591_v10 = vld [vmem:[#allocation15_spill] sm:$0xff]  ;;  %v639_v61 = vrot.slane %v631_v49, %v3189_v62  ;;  %v532_v49 = vcombine.high %v3642_v6, %v3663_v50 }
 0x1cd   : > { %v854_v34 = vcombine.high %v4583_v27, %v4582_v46  ;;  %v4589_v46 = vld [vmem:[#allocation29_spill] sm:$0xff]  ;;  %v4592_v33 = vcombine.high %v4590_v57, %v4591_v10  ;;  %v580_v57 = vcombine.high %v3726_v42, %v4551_v11  ;;  %v834_v10 = vcombine.high %v816_v35, %v4551_v11 }
 0x1ce   : > { %v3942_v17 = vpop.permute.xlu1 %2134  ;;  %v1844_v27 = vcombine.high %v4589_v46, %v4551_v11  ;;  %v4597_v35 = vld [vmem:[#allocation41_spill] sm:$0xff]  ;;  %v4019_v6 = vrot.slane %v532_v49, %v2987_v28  ;;  %v786_v50 = vcombine.high %v3691_v25, %v3710_v18  ;;  %v1554_v47 = vcombine.high %v1550_v14, %v4551_v11 }
 0x1cf   : > { %v3971_v15 = vrot.slane %v854_v34, %v2987_v28  ;;  %v516_v36 = vcombine.high %v4597_v35, %v3644_v52 }
 0x1d0   : > { %1644 = vrot.lane.b32.xlu1 %v1550_v14, %s2817_s22  ;;  %1420 = vrot.lane.b32.xlu0 %v1373_v29, %s2816_s20  ;;  %v4587_v29 = vld [vmem:[#allocation39_spill] sm:$0xff]  ;;  %v4042_v18 = vrot.slane %v786_v50, %v2987_v28 }
 0x1d1   : > { %v838_v12 = vcombine.high %v4588_v44, %v4587_v29  ;;  %v375_v44 = vrot.slane %v4592_v33, %v3189_v62  ;;  %v4031_v52 = vrot.slane %v516_v36, %v2987_v28  ;;  %v1776_v36 = vcombine.high %v1772_v38, %v4551_v11 }
 0x1d2   : > { %v3951_v8 = vpop.permute.xlu0 %1628  ;;  %v3973_v5 = vpop.permute.xlu1 %2388 }
 0x1d3   : > { %v3980_v29 = vrot.slane %v838_v12, %v2987_v28  ;;  %v563_v25 = vcombine.low %v4031_v52, %v4019_v6 }
 0x1d4   : > { %1866 = vrot.lane.b32.xlu1 %v1772_v38, %s2817_s22  ;;  %1676 = vrot.lane.b32.xlu0 %v1622_v30, %s2818_s26  ;;  %v393_v38 = vcombine.high %v375_v44, %v4551_v11 }
 0x1d5   : > { %v885_v34 = vcombine.low %v3980_v29, %v3971_v15 }
 0x1d6   : > { %v3982_v30 = vpop.permute.xlu0 %2106 }
 0x1d7   : > { %4593 = vst [vmem:[#allocation35_spill] sm:$0xff] %v3982_v30 }
 0x1d8   : > { %429 = vrot.lane.b32.xlu1 %v375_v44, %s2812_s7  ;;  %1898 = vrot.lane.b32.xlu0 %v1844_v27, %s2818_s26  ;;  %v893_v27 = vrot.slane %v885_v34, %v3189_v62  ;;  %v1051_v34 = vcombine.high %v1041_v13, %v4551_v11  ;;  %s2533_s7 = scalar_lea.hbm %s4469_s3, %s2623_s10 }
 0x1da   : > { %v3988_v46 = vpop.permute.xlu1 %1408  ;;  %v3995_v33 = vpop.permute.xlu0 %2360 }
 0x1dc   : > { %692 = vrot.lane.b32.xlu1 %v639_v61, %s2813_s8  ;;  %660 = vrot.lane.b32.xlu0 %v580_v57, %s2815_s19  ;;  %v4594_v57 = vld [vmem:[#allocation10_spill] sm:$0xff] }
 0x1dd   : > { %v4596_v16 = vcombine.high %v4594_v57, %v4595_v0  ;;  %v4598_v0 = vld [vmem:[#allocation32_spill] sm:$0xff] }
 0x1de   : > { %v3997_v12 = vpop.permute.xlu1 %1664 }
 0x1df   : > { %v1116_v2 = vrot.slane %v4596_v16, %v3189_v62  ;;  %v4599_v16 = vld [vmem:[#allocation33_spill] sm:$0xff] }
 0x1e0   : > { %946 = vrot.lane.b32.xlu1 %v893_v27, %s2813_s8  ;;  %914 = vrot.lane.b32.xlu0 %v834_v10, %s2815_s19  ;;  %v4600_v57 = vcombine.high %v4598_v0, %v4599_v16  ;;  %v571_v0 = vrot.slane %v563_v25, %v3189_v62  ;;  %v1288_v25 = vcombine.high %v3903_v7, %v3897_v41 }
 0x1e1   : > { %v1120_v7 = vcombine.high %v1116_v2, %v4551_v11 }
 0x1e2   : > { %v4005_v42 = vpop.permute.xlu1 %2142  ;;  %v4007_v53 = vpop.permute.xlu0 %1380  ;;  %v1370_v13 = vrot.slane %v4600_v57, %v3189_v62  ;;  %v1302_v41 = vrot.slane %v1288_v25, %v3189_v62  ;;  %v4605_v25 = vld [vmem:[#allocation18_spill] sm:$0xff]  ;;  %v581_v58 = vcombine.high %v571_v0, %v4551_v11 }
 0x1e4   : > { %1170 = vrot.lane.b32.xlu1 %v1116_v2, %s2817_s22  ;;  %1138 = vrot.lane.b32.xlu0 %v1051_v34, %s2816_s20  ;;  %v770_v34 = vcombine.high %v3665_v48, %v3699_v40  ;;  %v1374_v59 = vcombine.high %v1370_v13, %v4551_v11  ;;  %v4606_v2 = vld [vmem:[#allocation21_spill] sm:$0xff] }
 0x1e5   : > { %v277_v19 = vcombine.high %v4607_v4, %v4606_v2 }
 0x1e6   : > { %v4023_v10 = vpop.permute.xlu0 %1636  ;;  %v4035_v49 = vpop.permute.xlu1 %2396  ;;  %v4049_v48 = vrot.slane %v770_v34, %v2987_v28  ;;  %v649_v34 = vcombine.high %v639_v61, %v4551_v11 }
 0x1e7   : > { %v4114_v4 = vrot.slane %v277_v19, %v2987_v28 }
 0x1e8   : > { %1424 = vrot.lane.b32.xlu1 %v1370_v13, %s2817_s22  ;;  %1392 = vrot.lane.b32.xlu0 %v1305_v63, %s2816_s20  ;;  %v817_v40 = vcombine.low %v4049_v48, %v4042_v18  ;;  %v4609_v13 = vld [vmem:[#allocation17_spill] sm:$0xff] }
 0x1ea   : > { %v4044_v35 = vpop.permute.xlu0 %2114  ;;  %v4055_v63 = vpop.permute.xlu1 %684  ;;  %v825_v57 = vrot.slane %v817_v40, %v3189_v62  ;;  %v903_v40 = vcombine.high %v893_v27, %v4551_v11 }
 0x1eb   : > { %4601 = vst [vmem:[#allocation30_spill] sm:$0xff] %v4044_v35  ;;  %v4608_v35 = vld [vmem:[#allocation16_spill] sm:$0xff] }
 0x1ec   : > { %1870 = vrot.lane.b32.xlu1 %v1776_v36, %s2818_s26  ;;  %1648 = vrot.lane.b32.xlu0 %v1554_v47, %s2818_s26  ;;  %v4602_v47 = vcombine.high %v3082_v20, %v3085_v21  ;;  %v4603_v20 = vld [vmem:[#allocation22_spill] sm:$0xff]  ;;  %v4610_v30 = vcombine.low %v4608_v35, %v4609_v13 }
 0x1ed   : > { %v325_v21 = vcombine.high %v4603_v20, %v4551_v11 }
 0x1ee   : > { %v4057_v50 = vpop.permute.xlu0 %2368 }
 0x1f0   : > { %664 = vrot.lane.b32.xlu1 %v571_v0, %s2813_s8  ;;  %433 = vrot.lane.b32.xlu0 %v393_v38, %s2815_s19  ;;  %v1048_v38 = vrot.slane %v4602_v47, %v3189_v62 }
 0x1f2   : > { %v4063_v14 = vpop.permute.xlu1 %938  ;;  %v4065_v16 = vpop.permute.xlu0 %2122 }
 0x1f4   : > { %918 = vrot.lane.b32.xlu1 %v825_v57, %s2813_s8  ;;  %696 = vrot.lane.b32.xlu0 %v649_v34, %s2816_s20 }
 0x1f6   : > { %v4073_v44 = vpop.permute.xlu1 %1416  ;;  %v4075_v36 = vpop.permute.xlu0 %2094 }
 0x1f8   : > { %1142 = vrot.lane.b32.xlu1 %v1048_v38, %s2817_s22  ;;  %950 = vrot.lane.b32.xlu0 %v903_v40, %s2816_s20  ;;  %v4604_v40 = vld [vmem:[#allocation20_spill] sm:$0xff] }
 0x1f9   : > { %v261_v39 = vcombine.high %v4605_v25, %v4604_v40  ;;  %v835_v40 = vcombine.high %v825_v57, %v4551_v11  ;;  %v564_v57 = vcombine.high %v4031_v52, %v4019_v6 }
 0x1fa   : > { %v4084_v61 = vpop.permute.xlu1 %1672  ;;  %v2349_v34 = vpop.permute.xlu0 %2348 }
 0x1fc   : > { %1396 = vrot.lane.b32.xlu1 %v1302_v41, %s2817_s22  ;;  %1174 = vrot.lane.b32.xlu0 %v1120_v7, %s2818_s26  ;;  %v632_v7 = vcombine.high %v3960_v23, %v3947_v43  ;;  %v886_v43 = vcombine.high %v3980_v29, %v3971_v15 }
 0x1fe   : > { %v4092_v47 = vpop.permute.xlu1 %656  ;;  %v1653_v27 = vpop.permute.xlu0 %1652  ;;  %v900_v15 = vrot.slane %v886_v43, %v3189_v62 }
 0x200   : > { %405 = vrot.lane.b32.xlu1 %v325_v21, %s2815_s19  ;;  %1428 = vrot.lane.b32.xlu0 %v1374_v59, %s2818_s26  ;;  %v384_v21 = vrot.slane %v4610_v30, %v3189_v62  ;;  %v4111_v59 = vrot.slane %v261_v39, %v2987_v28  ;;  %v646_v30 = vrot.slane %v632_v7, %v3189_v62  ;;  %s2820_s19 = smov [#allocation7]  }
 0x201   : > { %v1306_v7 = vcombine.high %v1302_v41, %v4551_v11  ;;  %s2741_s16 = sshll.u32 %s2820_s19, 4  ;;  %s2742_s16 = int_to_ptr.vmem [resolvable:$false] %s2741_s16 }
 0x202   : > { %v2377_v32 = vpop.permute.xlu1 %2376  ;;  %v1625_v20 = vpop.permute.xlu0 %1624  ;;  %v308_v39 = vcombine.low %v4111_v59, %v4114_v4  ;;  %p2744_p5 = scmp.lt.s32.totalorder %s2536_s23, %s2742_s16 }
 0x203   : > { %v1679_v43 = vsel %vm452_vm3, %v3737_v3, %v1625_v20  ;;  %v818_v3 = vcombine.high %v4049_v48, %v4042_v18  ;;  %v2410_v20 = vsel %vm452_vm3, %v3734_v60, %v2377_v32 }
 0x204   : > { %668 = vrot.lane.b32.xlu1 %v581_v58, %s2816_s20  ;;  %437 = vrot.lane.b32.xlu0 %v384_v21, %s2813_s8  ;;  %v1052_v58 = vcombine.high %v1048_v38, %v4551_v11  ;;  %v316_v29 = vrot.slane %v308_v39, %v3189_v62  ;;  %v1686_v38 = vsel %vm452_vm3, %v3716_v56, %v1653_v27 }
 0x205   : > { %v394_v56 = vcombine.high %v384_v21, %v4551_v11  ;;  %v1680_v41 = vsel %vm454_vm4, %v1679_v43, %v3951_v8 }
 0x206   : > { %v4118_v23 = vpop.permute.xlu1 %2130  ;;  %v4120_v0 = vpop.permute.xlu0 %2102 }
 0x208   : > { %922 = vrot.lane.b32.xlu1 %v835_v40, %s2816_s20  ;;  %700 = vrot.lane.b32.xlu0 %v646_v30, %s2817_s22 }
 0x20a   : > { %v2385_v28 = vpop.permute.xlu1 %2384  ;;  %v2357_v19 = vpop.permute.xlu0 %2356 }
 0x20c   : > { %1146 = vrot.lane.b32.xlu1 %v1052_v58, %s2818_s26  ;;  %954 = vrot.lane.b32.xlu0 %v900_v15, %s2817_s22  ;;  %v650_v58 = vcombine.high %v646_v30, %v4551_v11  ;;  %v904_v30 = vcombine.high %v900_v15, %v4551_v11  ;;  %v4611_v15 = vcombine.high %v4608_v35, %v4609_v13 }
 0x20e   : > { %v1405_v25 = vpop.permute.xlu1 %1404  ;;  %v1377_v2 = vpop.permute.xlu0 %1376  ;;  %v391_v43 = vrot.slane %v4611_v15, %v3189_v62 }
 0x20f   : > { %v1438_v40 = vsel %vm452_vm3, %v3773_v37, %v1405_v25  ;;  %v1431_v39 = vsel %vm452_vm3, %v3776_v22, %v1377_v2  ;;  %v1687_v22 = vsel %vm454_vm4, %v1686_v38, %v3925_v45 }
 0x210   : > { %409 = vrot.lane.b32.xlu1 %v316_v29, %s2813_s8  ;;  %1400 = vrot.lane.b32.xlu0 %v1306_v7, %s2818_s26  ;;  %v1439_v6 = vsel %vm454_vm4, %v1438_v40, %v3988_v46  ;;  %v4150_v52 = vsel %vm454_vm4, %v1431_v39, %v4007_v53  ;;  %v578_v46 = vrot.slane %v564_v57, %v3189_v62  ;;  %v4612_v39 = vld [vmem:[#allocation42_spill] sm:$0xff]  ;;  %s2521_s8 = scalar_lea.sflag [#allocation6], %s2938_s5 }
 0x211   : > { %v2403_v53 = vsel %vm452_vm3, %v3682_v9, %v2349_v34  ;;  %v2411_v9 = vsel %vm454_vm4, %v2410_v20, %v3913_v51  ;;  %v832_v34 = vrot.slane %v818_v3, %v3189_v62  ;;  %v326_v51 = vcombine.high %v316_v29, %v4551_v11 }
 0x212   : > { %v1661_v37 = vpop.permute.xlu1 %1660  ;;  %v1633_v27 = vpop.permute.xlu0 %1632  ;;  %v2404_v60 = vsel %vm454_vm4, %v2403_v53, %v3932_v31  ;;  %v2412_v57 = vsel %vm456_vm5, %v2411_v9, %v2385_v28  ;;  %v582_v38 = vcombine.high %v578_v46, %v4551_v11  ;;  %v309_v40 = vcombine.high %v4111_v59, %v4114_v4 }
 0x213   : > { %v1688_v21 = vsel %vm456_vm5, %v1687_v22, %v1661_v37  ;;  %v1681_v18 = vsel %vm456_vm5, %v1680_v41, %v1633_v27  ;;  %v2413_v31 = vsel %vm458_vm6, %v2412_v57, %v3973_v5  ;;  %v4613_v41 = vld [vmem:[#allocation43_spill] sm:$0xff]  ;;  %v2819_v53 = vmov 0   ;;  %v4615_v57 = vld [vmem:[#allocation30_spill] sm:$0xff] }
 0x214   : > { %672 = vrot.lane.b32.xlu1 %v578_v46, %s2817_s22  ;;  %441 = vrot.lane.b32.xlu0 %v394_v56, %s2816_s20  ;;  %v1689_v45 = vsel %vm458_vm6, %v1688_v21, %v3997_v12  ;;  %v4172_v8 = vsel %vm458_vm6, %v1681_v18, %v4023_v10  ;;  %v2405_v12 = vsel %vm456_vm5, %v2404_v60, %v2357_v19  ;;  %v4614_v60 = vld [vmem:[#allocation35_spill] sm:$0xff] }
 0x215   : > { %v2406_v25 = vsel %vm458_vm6, %v2405_v12, %v3995_v33  ;;  %v2156_v56 = vsel %vm452_vm3, %v4612_v39, %v4065_v16  ;;  %v2149_v27 = vsel %vm452_vm3, %v4613_v41, %v4075_v36  ;;  %2686 = vset.pattern.permute.xlu0 %v2819_v53  ;;  %v4617_v39 = vld [vmem:[#allocation52_spill] sm:$0xff] }
 0x216   : > { %v2139_v32 = vpop.permute.xlu1 %2138  ;;  %v4178_v48 = vpop.permute.xlu0 %2110  ;;  %v2157_v16 = vsel %vm454_vm4, %v2156_v56, %v3892_v1  ;;  %v2150_v36 = vsel %vm454_vm4, %v2149_v27, %v3923_v54  ;;  %v4618_v56 = vld [vmem:[#allocation25_spill] sm:$0xff] }
 0x217   : > { %v2158_v3 = vsel %vm456_vm5, %v2157_v16, %v4118_v23  ;;  %v2151_v18 = vsel %vm456_vm5, %v2150_v36, %v4120_v0  ;;  %v4619_v16 = vld [vmem:[#allocation46_spill] sm:$0xff] }
 0x218   : > { %926 = vrot.lane.b32.xlu1 %v832_v34, %s2817_s22  ;;  %704 = vrot.lane.b32.xlu0 %v650_v58, %s2818_s26 }
 0x21a   : > { %v2393_v10 = vpop.permute.xlu1 %2392  ;;  %v2365_v2 = vpop.permute.xlu0 %2364 }
 0x21b   : > { %v2414_v28 = vsel %vm460_vm7, %v2413_v31, %v2393_v10  ;;  %v2407_v19 = vsel %vm460_vm7, %v2406_v25, %v2365_v2  ;;  %v4616_v25 = vld [vmem:[#allocation59_spill] sm:$0xff] }
 0x21c   : > { %413 = vrot.lane.b32.xlu1 %v326_v51, %s2816_s20  ;;  %958 = vrot.lane.b32.xlu0 %v904_v30, %s2818_s26  ;;  %v2415_v29 = vsel %vm462_vm8, %v2414_v28, %v4035_v49  ;;  %v2408_v5 = vsel %vm462_vm8, %v2407_v19, %v4057_v50  ;;  %s2743_s20 = scalar_lea.vmem %s2742_s16, 512 }
 0x21d   : > { %p2745_p7 = scmp.lt.s32.totalorder %s2743_s20, %s2737_s17 }
 0x21e   : > { %v935_v7 = vpop.permute.xlu1 %934  ;;  %v681_v33 = vpop.permute.xlu0 %680 }
 0x21f   : > { %v968_v49 = vsel %vm452_vm3, %v3822_v26, %v935_v7  ;;  %v714_v50 = vsel %vm452_vm3, %v3825_v55, %v681_v33  ;;  %v323_v26 = vrot.slane %v309_v40, %v3189_v62  ;;  %v836_v55 = vcombine.high %v832_v34, %v4551_v11  ;;  %p2746_p8 = por %p2745_p7, %p2744_p5 }
 0x220   : > { %676 = vrot.lane.b32.xlu1 %v582_v38, %s2818_s26  ;;  %445 = vrot.lane.b32.xlu0 %v391_v43, %s2817_s22  ;;  %v715_v35 = vsel %vm454_vm4, %v714_v50, %v4055_v63  ;;  %v4220_v13 = vsel %vm454_vm4, %v968_v49, %v4063_v14  ;;  %v2159_v14 = vsel %vm458_vm6, %v2158_v3, %v3942_v17 }
 0x221   : > { %v327_v22 = vcombine.high %v323_v26, %v4551_v11  ;;  %v1908_v49 = vsel %vm452_vm3, %v4618_v56, %v4617_v39  ;;  %p2747_p10 = pnand %p2746_p8, %p2740_p4 }
 0x222   : > { %v1413_v59 = vpop.permute.xlu1 %1412  ;;  %v653_v4 = vpop.permute.xlu0 %652 }
 0x223   : > { %v1440_v37 = vsel %vm456_vm5, %v1439_v6, %v1413_v59  ;;  %v707_v63 = vsel %vm452_vm3, %v3839_v24, %v653_v4  ;;  %v395_v24 = vcombine.high %v391_v43, %v4551_v11  ;;  %v2430_v11 = vld [vmem:[%s4468_s2] sm:$0xff]  ;;  %v1909_v59 = vsel %vm454_vm4, %v1908_v49, %v4619_v16  ;;  %v4620_v4 = vld [vmem:[#allocation54_spill] sm:$0xff] }
 0x224   : > { %417 = vrot.lane.b32.xlu1 %v323_v26, %s2817_s22  ;;  %930 = vrot.lane.b32.xlu0 %v836_v55, %s2818_s26  ;;  %v4235_v1 = vsel %vm458_vm6, %v1440_v37, %v4073_v44  ;;  %v4239_v62 = vsel %vm454_vm4, %v707_v63, %v4092_v47  ;;  %v2160_v44 = vsel %vm460_vm7, %v2159_v14, %v2139_v32  ;;  %v4621_v37 = vld [vmem:[#allocation50_spill] sm:$0xff]  ;;  %v4632_v49 = vld [vmem:[#allocation48_spill] sm:$0xff] }
 0x225   : > { %v2161_v20 = vsel %vm462_vm8, %v2160_v44, %v4005_v42  ;;  %v2152_v32 = vsel %vm458_vm6, %v2151_v18, %v4614_v60  ;;  %v4625_v18 = vld [vmem:[#allocation24_spill] sm:$0xff] }
 0x226   : > { %v1669_v23 = vpop.permute.xlu1 %1668  ;;  %v907_v6 = vpop.permute.xlu0 %906  ;;  %v2153_v42 = vsel %vm460_vm7, %v2152_v32, %v4178_v48  ;;  %v4626_v60 = vld [vmem:[#allocation44_spill] sm:$0xff] }
 0x227   : > { %v1690_v46 = vsel %vm460_vm7, %v1689_v45, %v1669_v23  ;;  %v2154_v12 = vsel %vm462_vm8, %v2153_v42, %v4615_v57  ;;  %v961_v2 = vsel %vm452_vm3, %v4616_v25, %v907_v6  ;;  %v4622_v23 = vld [vmem:[#allocation58_spill] sm:$0xff] }
 0x228   : > { %421 = vrot.lane.b32.xlu1 %v327_v22, %s2818_s26  ;;  %449 = vrot.lane.b32.xlu0 %v395_v24, %s2818_s26  ;;  %v1691_v17 = vsel %vm462_vm8, %v1690_v46, %v4084_v61  ;;  %v4623_v22 = vld [vmem:[#allocation63_spill] sm:$0xff] }
 0x22a   : > { %v2147_v47 = vpop.permute.xlu1 %2146  ;;  %v1385_v21 = vpop.permute.xlu0 %1384 }
 0x22b   : > { %v2162_v45 = vsel %vm464_vm9, %v2161_v20, %v2147_v47  ;;  %v1433_v61 = vsel %vm456_vm5, %v4150_v52, %v1385_v21  ;;  %v4624_v21 = vld [vmem:[#allocation53_spill] sm:$0xff] }
 0x22c   : > { %v2166_v9 = vrot.slane %v2162_v45, 4  ;;  %2433 = vperm.xlu0 %2686, %v2430_v11   ;;  %v1901_v45 = vsel %vm452_vm3, %v4625_v18, %v4624_v21  ;;  %v4636_v21 = vld [vmem:[#allocation27_spill] sm:$0xff] }
 0x22d   : > { %v1902_v32 = vsel %vm454_vm4, %v1901_v45, %v4626_v60  ;;  %v4637_v45 = vld [vmem:[#allocation47_spill] sm:$0xff]  ;;  %v4638_v60 = vld [vmem:[#allocation62_spill] sm:$0xff] }
 0x22e   : > { %2170 = vst [vmem:[#allocation3 + $0x20] sm:$0xf0] %v2166_v9  ;;  %v2401_v54 = vpop.permute.xlu1 %2400  ;;  %v4268_v34 = vpop.permute.xlu0 %1640 }
 0x22f   : > { %v2416_v58 = vsel %vm464_vm9, %v2415_v29, %v2401_v54  ;;  %v4627_v54 = vld [vmem:[#allocation60_spill] sm:$0xff] }
 0x230   : > { %2418 = vst [vmem:[#allocation3 + $0x38] sm:$0xf] %v2416_v58 }
 0x232   : > { %v2373_v0 = vpop.permute.xlu1 %2372  ;;  %v2119_v52 = vpop.permute.xlu0 %2118 }
 0x233   : > { %v2409_v51 = vsel %vm464_vm9, %v2408_v5, %v2373_v0  ;;  %v2155_v31 = vsel %vm464_vm9, %v2154_v12, %v2119_v52  ;;  %v4628_v0 = vld [vmem:[#allocation49_spill] sm:$0xff]  ;;  %v4629_v12 = vld [vmem:[#allocation64_spill] sm:$0xff] }
 0x234   : > { %2417 = vst [vmem:[#allocation3 + $0x40] sm:$0xf] %v2409_v51  ;;  %v2165_v10 = vrot.slane %v2155_v31, 4  ;;  %v1683_v51 = vsel %vm460_vm7, %v4172_v8, %v4268_v34  ;;  %v4630_v34 = vld [vmem:[#allocation55_spill] sm:$0xff] }
 0x236   : > { %2169 = vst [vmem:[#allocation3 + $0x8] sm:$0xf0] %v2165_v10  ;;  %v911_v48 = vpop.permute.xlu1 %910  ;;  %v689_v30 = vpop.permute.xlu0 %688 }
 0x237   : > { %v962_v28 = vsel %vm454_vm4, %v961_v2, %v911_v48  ;;  %v4281_v19 = vsel %vm456_vm5, %v715_v35, %v689_v30  ;;  %v2429_v29 = vld [vmem:[#allocation3 + $0x38] sm:$0xf] }
 0x238   : > { %2614 = vmatprep.subr.msk.mxu0 %vm2440_vm10, %v2429_v29 }
 0x23a   : > { %v4283_v7 = vpop.permute.xlu1 %1134  ;;  %v943_v5 = vpop.permute.xlu0 %942 }
 0x23b   : > { %v4287_v33 = vsel %vm456_vm5, %v4220_v13, %v943_v5  ;;  %v2428_v38 = vld [vmem:[#allocation3 + $0x40] sm:$0xf]  ;;  %v1910_v13 = vsel %vm456_vm5, %v1909_v59, %v4620_v4 }
 0x23c   : > { %2615 = vmatpush1.msk.msra.mxu0 %vm2440_vm10, %v2428_v38  ;;  %v1911_v63 = vsel %vm458_vm6, %v1910_v13, %v4621_v37  ;;  %v4633_v4 = vld [vmem:[#allocation56_spill] sm:$0xff] }
 0x23d   : > { %v1912_v6 = vsel %vm460_vm7, %v1911_v63, %v4622_v23 }
 0x23e   : > { %v1389_v15 = vpop.permute.xlu1 %1388  ;;  %v1167_v43 = vpop.permute.xlu0 %1166  ;;  %v1913_v24 = vsel %vm462_vm8, %v1912_v6, %v4623_v22 }
 0x23f   : > { %v4290_v40 = vsel %vm458_vm6, %v1433_v61, %v1389_v15  ;;  %v4631_v15 = vld [vmem:[#allocation26_spill] sm:$0xff] }
 0x240   : > { %v1184_v39 = vsel %vm452_vm3, %v4631_v15, %v4630_v34 }
 0x242   : > { %v1645_v50 = vpop.permute.xlu1 %1644  ;;  %v1421_v35 = vpop.permute.xlu0 %1420 }
 0x243   : > { %v1684_v31 = vsel %vm462_vm8, %v1683_v51, %v1645_v50  ;;  %v1185_v50 = vsel %vm454_vm4, %v1184_v39, %v4632_v49  ;;  %v1442_v22 = vsel %vm460_vm7, %v4235_v1, %v1421_v35 }
 0x244   : > { %v1186_v13 = vsel %vm456_vm5, %v1185_v50, %v4633_v4 }
 0x246   : > { %v1867_v26 = vpop.permute.xlu1 %1866  ;;  %v1677_v55 = vpop.permute.xlu0 %1676 }
 0x247   : > { %v1692_v3 = vsel %vm464_vm9, %v1691_v17, %v1677_v55 }
 0x248   : > { %v1696_v14 = vrot.slane %v1692_v3, 4 }
 0x24a   : > { %1700 = vst [vmem:[#allocation3 + $0x28] sm:$0xf0] %v1696_v14  ;;  %v4306_v41 = vpop.permute.xlu1 %429  ;;  %v1899_v27 = vpop.permute.xlu0 %1898 }
 0x24b   : > { %v1914_v44 = vsel %vm464_vm9, %v1913_v24, %v1899_v27 }
 0x24c   : > { %1916 = vst [vmem:[#allocation3 + $0x20] sm:$0xf] %v1914_v44 }
 0x24e   : > { %v4309_v46 = vpop.permute.xlu1 %692  ;;  %v661_v53 = vpop.permute.xlu0 %660 }
 0x24f   : > { %v4313_v17 = vsel %vm456_vm5, %v4239_v62, %v661_v53  ;;  %v1903_v62 = vsel %vm456_vm5, %v1902_v32, %v4627_v54 }
 0x250   : > { %v1904_v57 = vsel %vm458_vm6, %v1903_v62, %v4628_v0 }
 0x251   : > { %v1905_v52 = vsel %vm460_vm7, %v1904_v57, %v4629_v12 }
 0x252   : > { %v4315_v11 = vpop.permute.xlu1 %946  ;;  %v915_v36 = vpop.permute.xlu0 %914  ;;  %v1906_v10 = vsel %vm462_vm8, %v1905_v52, %v1867_v26  ;;  %v4634_v26 = vld [vmem:[#allocation61_spill] sm:$0xff] }
 0x253   : > { %v4318_v47 = vsel %vm456_vm5, %v962_v28, %v915_v36  ;;  %v2427_v20 = vld [vmem:[#allocation3 + $0x20] sm:$0xff]  ;;  %v1187_v55 = vsel %vm458_vm6, %v1186_v13, %v4634_v26 }
 0x254   : > { %2471 = vmatprep.subr.mxu0 %v2427_v20  ;;  %v1188_v3 = vsel %vm460_vm7, %v1187_v55, %v1167_v43  ;;  %v4635_v20 = vld [vmem:[#allocation57_spill] sm:$0xff]  ;;  %v4639_v55 = vld [vmem:[#allocation51_spill] sm:$0xff] }
 0x255   : > { %v1177_v18 = vsel %vm452_vm3, %v4636_v21, %v4635_v20 }
 0x256   : > { %v1171_v61 = vpop.permute.xlu1 %1170  ;;  %v1139_v9 = vpop.permute.xlu0 %1138 }
 0x257   : > { %v1189_v37 = vsel %vm462_vm8, %v1188_v3, %v1171_v61  ;;  %v1178_v61 = vsel %vm454_vm4, %v1177_v18, %v4637_v45 }
 0x258   : > { %v1179_v32 = vsel %vm456_vm5, %v1178_v61, %v4638_v60 }
 0x259   : > { %v1180_v62 = vsel %vm458_vm6, %v1179_v32, %v4283_v7 }
 0x25a   : > { %v1425_v42 = vpop.permute.xlu1 %1424  ;;  %v1393_v58 = vpop.permute.xlu0 %1392 }
 0x25b   : > { %v1443_v24 = vsel %vm462_vm8, %v1442_v22, %v1425_v42  ;;  %v1181_v42 = vsel %vm460_vm7, %v1180_v62, %v1139_v9 }
 0x25e   : > { %v1871_v25 = vpop.permute.xlu1 %1870  ;;  %v1649_v2 = vpop.permute.xlu0 %1648 }
 0x25f   : > { %v1907_v48 = vsel %vm464_vm9, %v1906_v10, %v1871_v25  ;;  %v1685_v30 = vsel %vm464_vm9, %v1684_v31, %v1649_v2  ;;  %v1435_v31 = vsel %vm460_vm7, %v4290_v40, %v1393_v58 }
 0x260   : > { %1915 = vst [vmem:[#allocation3 + $0x8] sm:$0xf] %v1907_v48  ;;  %v1695_v28 = vrot.slane %v1685_v30, 4  ;;  %v717_v30 = vsel %vm458_vm6, %v4281_v19, %v4309_v46 }
 0x262   : > { %1699 = vst [vmem:[#allocation3 + $0x48] sm:$0xf0] %v1695_v28  ;;  %v4338_v29 = vpop.permute.xlu1 %664  ;;  %v4340_v5 = vpop.permute.xlu0 %433 }
 0x263   : > { %v710_v4 = vsel %vm458_vm6, %v4313_v17, %v4338_v29  ;;  %v4642_v17 = vld [vmem:[#allocation28_spill] sm:$0xff] }
 0x266   : > { %v4342_v38 = vpop.permute.xlu1 %918  ;;  %v697_v8 = vpop.permute.xlu0 %696 }
 0x267   : > { %v2426_v56 = vld [vmem:[#allocation3 + $0x8] sm:$0xff]  ;;  %v718_v28 = vsel %vm460_vm7, %v717_v30, %v697_v8 }
 0x268   : > { %2472 = vmatpush1.msra.mxu0 %v2426_v56  ;;  %v971_v56 = vsel %vm458_vm6, %v4287_v33, %v4315_v11 }
 0x26a   : > { %v1143_v16 = vpop.permute.xlu1 %1142  ;;  %v951_v59 = vpop.permute.xlu0 %950 }
 0x26b   : > { %v1182_v0 = vsel %vm462_vm8, %v1181_v42, %v1143_v16  ;;  %v972_v50 = vsel %vm460_vm7, %v971_v56, %v951_v59  ;;  %v4640_v59 = vld [vmem:[#allocation23_spill] sm:$0xff] }
 0x26c   : > { %v453_v3 = vsel %vm452_vm3, %v4640_v59, %v4639_v55 }
 0x26e   : > { %v1397_v63 = vpop.permute.xlu1 %1396  ;;  %v1175_v14 = vpop.permute.xlu0 %1174 }
 0x26f   : > { %v1190_v23 = vsel %vm464_vm9, %v1189_v37, %v1175_v14  ;;  %v1436_v10 = vsel %vm462_vm8, %v1435_v31, %v1397_v63  ;;  %v964_v63 = vsel %vm458_vm6, %v4318_v47, %v4342_v38 }
 0x270   : > { %v1194_v6 = vrot.slane %v1190_v23, 4  ;;  %v4641_v23 = vld [vmem:[#allocation65_spill] sm:$0xff] }
 0x271   : > { %v466_v29 = vsel %vm452_vm3, %v4642_v17, %v4641_v23 }
 0x272   : > { %1198 = vst [vmem:[#allocation3 + $0x10] sm:$0xf0] %v1194_v6  ;;  %v4359_v27 = vpop.permute.xlu1 %405  ;;  %v1429_v44 = vpop.permute.xlu0 %1428  ;;  %v467_v22 = vsel %vm454_vm4, %v466_v29, %v4306_v41 }
 0x273   : > { %v1444_v53 = vsel %vm464_vm9, %v1443_v24, %v1429_v44  ;;  %v4643_v24 = vld [vmem:[#allocation45_spill] sm:$0xff]  ;;  %v468_v47 = vsel %vm456_vm5, %v467_v22, %v4340_v5 }
 0x274   : > { %1446 = vst [vmem:[#allocation3 + $0x28] sm:$0xf] %v1444_v53  ;;  %v455_v44 = vsel %vm454_vm4, %v453_v3, %v4643_v24 }
 0x275   : > { %v457_v38 = vsel %vm456_vm5, %v455_v44, %v4359_v27 }
 0x276   : > { %v669_v43 = vpop.permute.xlu1 %668  ;;  %v4362_v36 = vpop.permute.xlu0 %437 }
 0x277   : > { %v711_v13 = vsel %vm460_vm7, %v710_v4, %v669_v43  ;;  %v469_v41 = vsel %vm458_vm6, %v468_v47, %v4362_v36 }
 0x27a   : > { %v923_v1 = vpop.permute.xlu1 %922  ;;  %v701_v35 = vpop.permute.xlu0 %700 }
 0x27b   : > { %v2425_v54 = vld [vmem:[#allocation3 + $0x28] sm:$0xff]  ;;  %v719_v34 = vsel %vm462_vm8, %v718_v28, %v701_v35  ;;  %v965_v6 = vsel %vm460_vm7, %v964_v63, %v923_v1 }
 0x27c   : > { %2473 = vmatprep.subr.mxu0 %v2425_v54 }
 0x27e   : > { %v1147_v57 = vpop.permute.xlu1 %1146  ;;  %v955_v12 = vpop.permute.xlu0 %954 }
 0x27f   : > { %v1183_v52 = vsel %vm464_vm9, %v1182_v0, %v1147_v57  ;;  %v973_v16 = vsel %vm462_vm8, %v972_v50, %v955_v12  ;;  %v2419_v0 = vld [vmem:[%s4467_s1] sm:$0xff] }
 0x280   : > { %v1193_v51 = vrot.slane %v1183_v52, 4 }
 0x282   : > { %1197 = vst [vmem:[#allocation3 + $0x18] sm:$0xf0] %v1193_v51  ;;  %v410_v25 = vpop.permute.xlu1 %409  ;;  %v1401_v2 = vpop.permute.xlu0 %1400 }
 0x283   : > { %v1437_v7 = vsel %vm464_vm9, %v1436_v10, %v1401_v2  ;;  %v459_v45 = vsel %vm458_vm6, %v457_v38, %v410_v25 }
 0x284   : > { %1445 = vst [vmem:[#allocation3 + $0x48] sm:$0xf] %v1437_v7 }
 0x286   : > { %v673_v48 = vpop.permute.xlu1 %672  ;;  %v442_v9 = vpop.permute.xlu0 %441 }
 0x287   : > { %v712_v33 = vsel %vm462_vm8, %v711_v13, %v673_v48  ;;  %v470_v61 = vsel %vm460_vm7, %v469_v41, %v442_v9 }
 0x28a   : > { %v927_v15 = vpop.permute.xlu1 %926  ;;  %v705_v40 = vpop.permute.xlu0 %704 }
 0x28b   : > { %v720_v58 = vsel %vm464_vm9, %v719_v34, %v705_v40  ;;  %v2424_v39 = vld [vmem:[#allocation3 + $0x48] sm:$0xff]  ;;  %v966_v53 = vsel %vm462_vm8, %v965_v6, %v927_v15 }
 0x28c   : > { %v724_v49 = vrot.slane %v720_v58, 4  ;;  %2474 = vmatpush1.msra.mxu0 %v2424_v39 }
 0x28e   : > { %728 = vst [vmem:[#allocation3] sm:$0xf0] %v724_v49  ;;  %v414_v19 = vpop.permute.xlu1 %413  ;;  %v959_v46 = vpop.permute.xlu0 %958 }
 0x28f   : > { %v974_v8 = vsel %vm464_vm9, %v973_v16, %v959_v46  ;;  %v461_v1 = vsel %vm460_vm7, %v459_v45, %v414_v19 }
 0x290   : > { %976 = vst [vmem:[#allocation3 + $0x10] sm:$0xf] %v974_v8 }
 0x292   : > { %v677_v11 = vpop.permute.xlu1 %676  ;;  %v446_v26 = vpop.permute.xlu0 %445 }
 0x293   : > { %v713_v37 = vsel %vm464_vm9, %v712_v33, %v677_v11  ;;  %v471_v35 = vsel %vm462_vm8, %v470_v61, %v446_v26 }
 0x294   : > { %v723_v14 = vrot.slane %v713_v37, 4 }
 0x296   : > { %727 = vst [vmem:[#allocation3 + $0x30] sm:$0xf0] %v723_v14  ;;  %v418_v43 = vpop.permute.xlu1 %417  ;;  %v931_v20 = vpop.permute.xlu0 %930 }
 0x297   : > { %v967_v21 = vsel %vm464_vm9, %v966_v53, %v931_v20  ;;  %v2423_v18 = vld [vmem:[#allocation3 + $0x10] sm:$0xff]  ;;  %v463_v5 = vsel %vm462_vm8, %v461_v1, %v418_v43 }
 0x298   : > { %975 = vst [vmem:[#allocation3 + $0x18] sm:$0xf] %v967_v21  ;;  %2475 = vmatprep.subr.mxu0 %v2423_v18 }
 0x29a   : > { %v422_v27 = vpop.permute.xlu1 %421  ;;  %v450_v60 = vpop.permute.xlu0 %449 }
 0x29b   : > { %v465_v32 = vsel %vm464_vm9, %v463_v5, %v422_v27  ;;  %v472_v36 = vsel %vm464_vm9, %v471_v35, %v450_v60 }
 0x29c   : > { %473 = vst [vmem:[#allocation3 + $0x30] sm:$0xf] %v465_v32  ;;  %474 = vst [vmem:[#allocation3] sm:$0xf] %v472_v36 }
 0x29f   : > { %v2422_v54 = vld [vmem:[#allocation3 + $0x18] sm:$0xff] }
 0x2a0   : > { %2476 = vmatpush1.msra.mxu0 %v2422_v54 }
 0x2a3   : > { %v2421_v62 = vld [vmem:[#allocation3] sm:$0xff]  ;;  %v2420_v42 = vld [vmem:[#allocation3 + $0x30] sm:$0xff] }
 0x2a4   : > { %2477 = vmatprep.subr.mxu0 %v2421_v62 }
 0x2a5   : > { %2478 = vmatpush1.msra.mxu0 %v2420_v42 }
 0x2a6   : > { %2616 = vmatmul.mubr.msk.f32.vlgmr.msra.gmra.mxu0 %vm2436_vm11, %v2419_v0 }
 0x2a7   : > { %v2434_v57 = vpop.permute.xlu0 %2433 }
 0x366   : > { %v2513_v12 = vpop.f32.mrf.mxu0 }
 0x367   : > { %v2514_v52 = vadd.f32 %v2513_v12, %v2434_v57 }
 0x368   : > { %v2515_v51 = vpop.f32.mrf.mxu0 }
 0x369   : > { %2518 = vst [vmem:[%s188_s11] sm:$0xff] %v2514_v52  ;;  %v2516_v31 = vadd.f32 %v2515_v51, %v2434_v57 }
 0x36b   : > { %2519 = vst [vmem:[%s188_s11 + $0x8] sm:$0xff] %v2516_v31 }
 0x36c   : > { %2750 = shalt.err (!%p2747_p10)
}
 0x36d   : > { %s2751_s22 = scalar_lea.hbm %s2533_s7, 256  ;;  %s2755_s27 = scalar_lea.hbm %s4469_s3, 512 }
 0x36e   : > { %p2752_p0 = scmp.ne.s32.totalorder %s2533_s7, %s2751_s22  ;;  %p2756_p1 = scmp.lt.s32.totalorder %s2533_s7, %s4469_s3 }
 0x36f   : > { %p2757_p3 = scmp.lt.s32.totalorder %s2755_s27, %s2751_s22 }
 0x370   : > { %p2753_p2 = pnand %p2752_p0, %p4644_p12 }
 0x371   : > { %p2758_p6 = por %p2757_p3, %p2756_p1 }
 0x372   : > { %p2754_p9 = pneg %p2753_p2 }
 0x374   : > { %p2759_p11 = pnand %p2758_p6, %p2754_p9 }
 0x376   : > { %2762 = shalt.err (!%p2759_p11)
}
 0x377   : > { %2626 = dma.vmem_to_hbm [thread:$0]  (%p4644_p12), %s2536_s23, 256, %s2533_s7, %s2521_s8  }
 0x378 PF: > { %s2547_s30 = sand.u32 1, %s2789_s12   ;;  %p4645_p13 = scmp.ne.s32.totalorder %s4514_s25, 0 }
 0x379   : > { %p4646_p4 = scmp.ge.s32.totalorder %s2801_s15, 2  ;;  %s2548_s9 = scalar_lea.sflag [#allocation6], %s2547_s30 }
 0x37b   : > { %p2633_p5 = pnand %p4646_p4, %p4645_p13 }
 0x37d   : > { %p2634_p7 = pneg %p2633_p5 }
 0x37f   : > { %2784 = dma.done.wait (%p2634_p7), %s2548_s9, 256  }
 0x380   : > { %2786 = vsyncadd (%p2634_p7), %s2548_s9, 4294967040  ;;  %p16_p8 = scmp.ge.s32.totalorder %s2866_s18, 4   ;;  %s4647_s12 = smov %s2793_s13 }
 0x381   : > { %s4648_s13 = smov %s2797_s14  ;;  %s4649_s14 = smov %s2878_s21 }
 0x382   : > { %s4650_s15 = smov %s2866_s18  ;;  %18 = sbr.rel (!%p16_p8) target bundleno = 5 (0x5), region = 77 }
 0x387   :  { %2553 = vsyncpa [#allocation5], 1 }
 0x388   :  { %2555 = vsyncpa [#allocation5 + $0x1], 1 }
 0x389   :  { %2556 = vsyncpa [#allocation6], 1 }
 0x38a   :  { %2558 = vsyncpa [#allocation6 + $0x1], 1 }

</bundles_post_ra>
